<compile_context>
chip_gen: v5e
topology: v5e:2x2
jax: 0.10.0
libtpu: 0.0.40
codegen_flags: <defaults>
</compile_context>

<pallas_src>
import functools

import jax
import jax.numpy as jnp
import numpy as np
from jax import lax
from jax.experimental import pallas as pl
from jax.experimental.pallas import tpu as pltpu


# -----------------------------------------------------------------------------
# Fused kernel: T message-passing iterations + read-out, one batch tile / step.
# -----------------------------------------------------------------------------
def _fused_kernel(e_ref,
                  E_ref, W_ref, adjF_ref, adjG_ref, Mu_ref,
                  w12_ref, b12_ref, w11t_ref, b11_ref,
                  w2t_ref, b2_ref, w4_ref, b4_ref, w3t_ref, b3_ref,
                  w7t_ref, b7_ref, w6t_ref, b6_ref,
                  w5a_ref, w5b_ref, b5_ref,
                  out_ref, *, T, b_tile, n, p):
    f32 = jnp.float32
    inv_n = 1.0 / float(n)
    third = 1.0 / 3.0
    bn = b_tile * n

    E = E_ref[...]          # (B, n, n)
    Wg = W_ref[...]         # (B, n, n)
    adjF = adjF_ref[...]    # (B, n, n)
    adjG = adjG_ref[...]    # (B, n, n)

    w12 = w12_ref[...]      # (1, p)
    b12 = b12_ref[...]      # (1, p)
    w4 = w4_ref[...]        # (1, p)
    b4 = b4_ref[...]        # (1, p)
    w2t = w2t_ref[...]      # (p, p)
    b2 = b2_ref[...]        # (1, p)

    # ------------------------------------------------------------------
    # Iteration-invariant pieces (computed once, outside the T loop):
    #   theta1   : relu(E^T * w12 + b12) masked by adj_F, reduced, Linear11
    #   theta34  : relu(W^T * w4  + b4 ) masked by adj_G, reduced, Linear3
    #   theta2's bias term:  (1/n) * rowsum(adj_G) * b2   (Mu-independent)
    # ------------------------------------------------------------------
    pre1, pre3, rowg = [], [], []
    for bb in range(b_tile):
        Et = E[bb].T                                                    # (n, n)
        t12 = jnp.maximum(Et[:, :, None] * w12[0][None, None, :]
                          + b12[0][None, None, :], 0.0)                 # (n, n, p)
        pre1.append(jnp.sum(adjF[bb][:, :, None] * t12, axis=1))        # (n, p)

        Wt = Wg[bb].T
        t4 = jnp.maximum(Wt[:, :, None] * w4[0][None, None, :]
                         + b4[0][None, None, :], 0.0)                   # (n, n, p)
        pre3.append(jnp.sum(adjG[bb][:, :, None] * t4, axis=1))         # (n, p)

        rowg.append(jnp.sum(adjG[bb], axis=1, keepdims=True))           # (n, 1)

    theta11_pre = jnp.concatenate(pre1, axis=0) * inv_n                 # (bn, p)
    theta3_pre = jnp.concatenate(pre3, axis=0) * inv_n                  # (bn, p)
    adjG_rowsum = jnp.concatenate(rowg, axis=0) * inv_n                 # (bn, 1)

    theta11 = (jnp.dot(theta11_pre, w11t_ref[...],
                       preferred_element_type=f32) + b11_ref[...])      # (bn, p)
    theta3 = (jnp.dot(theta3_pre, w3t_ref[...],
                      preferred_element_type=f32) + b3_ref[...])        # (bn, p)
    # Fold the final /3 into the invariant term and into W2^T once.
    theta_const3 = (theta11 + theta3 + adjG_rowsum * b2) * third        # (bn, p)
    w2t_eff = w2t * (inv_n * third)                                     # (p, p)

    # ------------------------------------------------------------------
    # T message-passing iterations; Mu stays on-chip the whole time.
    #   Mu <- relu(theta_const3 + adj_G @ (Mu @ w2t_eff))
    # ------------------------------------------------------------------
    def body(_, mu_flat):
        t2lin = jnp.dot(mu_flat, w2t_eff, preferred_element_type=f32)   # (bn, p)
        theta2 = jnp.einsum("bij,bjk->bik", adjG,
                            t2lin.reshape(b_tile, n, p),
                            preferred_element_type=f32)                 # (B, n, p)
        return jnp.maximum(theta_const3 + theta2.reshape(bn, p), 0.0)

    mu_flat = lax.fori_loop(0, T, body, Mu_ref[...].reshape(bn, p),
                            unroll=True)                                # (bn, p)

    # ------------------------------------------------------------------
    # Read-out (fused): rows e[b,0], e[b,1] selected via iota-mask + reduce
    # (no dynamic vreg slicing), node mean, theta6/7/5.
    # ------------------------------------------------------------------
    base = pl.program_id(0) * b_tile
    iota_n = lax.broadcasted_iota(jnp.int32, (n, 1), 0)                 # (n, 1)
    tmp_rows, mean_rows = [], []
    for bb in range(b_tile):
        Mu_b = mu_flat[bb * n:(bb + 1) * n, :]                          # (n, p)
        e0 = e_ref[base + bb, 0]
        e1 = e_ref[base + bb, 1]
        sel = ((iota_n == e0).astype(f32)
               + (iota_n == e1).astype(f32)) * 0.5                      # (n, 1)
        tmp_rows.append(jnp.sum(sel * Mu_b, axis=0, keepdims=True))     # (1, p)
        mean_rows.append(jnp.sum(Mu_b, axis=0, keepdims=True) * inv_n)  # (1, p)
    mu_tmp = jnp.concatenate(tmp_rows, axis=0)                          # (B, p)
    mu_mean = jnp.concatenate(mean_rows, axis=0)                        # (B, p)

    theta7 = jnp.dot(mu_tmp, w7t_ref[...],
                     preferred_element_type=f32) + b7_ref[...]
    theta6 = jnp.dot(mu_mean, w6t_ref[...],
                     preferred_element_type=f32) + b6_ref[...]

    # theta5(concat(relu(theta6), relu(theta7))) as a split matmul.
    out = (jnp.dot(jnp.maximum(theta6, 0.0), w5a_ref[...],
                   preferred_element_type=f32)
           + jnp.dot(jnp.maximum(theta7, 0.0), w5b_ref[...],
                     preferred_element_type=f32)
           + b5_ref[...])                                               # (B, 2)

    for bb in range(b_tile):
        out_ref[bb] = out[bb:bb + 1, :]


# -----------------------------------------------------------------------------
# Wrapper
# -----------------------------------------------------------------------------
def _pick_b_tile(bt, n, p, target_rows=256, vmem_budget_bytes=8 * 1024 * 1024):
    """Largest divisor of bt with b_tile*n <= target_rows that fits VMEM."""
    lanes = max(p, 128)
    best = 1
    for cand in range(1, bt + 1):
        if bt % cand or cand * n > target_rows:
            continue
        est = ((4 * cand * n * n + 3 * cand * n * lanes) * 2   # dbl-buffered I/O + Mu/const
               + 2 * n * n * lanes) * 4                        # rank-3 relu intermediates
        if est <= vmem_budget_bytes:
            best = cand
    return best


def graph_embedding_forward_pallas(E, Wg, adjF, adjG, Mu0, e, kp, T):
    bt, n, _ = E.shape
    p = Mu0.shape[-1]
    b_tile = _pick_b_tile(bt, n, p)
    grid = (bt // b_tile,)

    def bmap(b, e_):          # batched arrays: one block per batch tile
        return (b, 0, 0)

    def cmap(b, e_):          # weights: same block for every grid step
        return (0, 0)

    bnn = lambda: pl.BlockSpec((b_tile, n, n), bmap)
    row = lambda: pl.BlockSpec((1, p), cmap)
    sq = lambda: pl.BlockSpec((p, p), cmap)

    kernel = functools.partial(_fused_kernel, T=T, b_tile=b_tile, n=n, p=p)

    grid_spec = pltpu.PrefetchScalarGridSpec(
        num_scalar_prefetch=1,          # e -> SMEM, indexable in the kernel
        grid=grid,
        in_specs=[
            bnn(), bnn(), bnn(), bnn(),                     # E, W, adj_F, adj_G
            pl.BlockSpec((b_tile, n, p), bmap),             # Mu0
            row(), row(),                                   # w12, b12
            sq(), row(),                                    # w11t, b11
            sq(), row(),                                    # w2t, b2
            row(), row(),                                   # w4, b4
            sq(), row(),                                    # w3t, b3
            sq(), row(),                                    # w7t, b7
            sq(), row(),                                    # w6t, b6
            pl.BlockSpec((p, 2), cmap),                     # w5t[:p]
            pl.BlockSpec((p, 2), cmap),                     # w5t[p:]
            pl.BlockSpec((1, 2), cmap),                     # b5
        ],
        out_specs=pl.BlockSpec((b_tile, 1, 2), bmap),
    )
    return pl.pallas_call(
        kernel,
        out_shape=jax.ShapeDtypeStruct((bt, 1, 2), jnp.float32),
        grid_spec=grid_spec,
        compiler_params=pltpu.CompilerParams(
            dimension_semantics=("parallel",),
            vmem_limit_bytes=32 * 1024 * 1024,
        ),
    )(e, E, Wg, adjF, adjG, Mu0,
      kp["w12_row"], kp["b12_row"], kp["w11t"], kp["b11_row"],
      kp["w2t"], kp["b2_row"], kp["w4_row"], kp["b4_row"],
      kp["w3t"], kp["b3_row"],
      kp["w7t"], kp["b7_row"], kp["w6t"], kp["b6_row"],
      kp["w5t_a"], kp["w5t_b"], kp["b5_row"])


@functools.partial(jax.jit, static_argnames=("T",))
def graph_embedding_forward(E, Wg, adjF, adjG, Mu0, e, kp, T):
    return graph_embedding_forward_pallas(E, Wg, adjF, adjG, Mu0, e, kp, T)


# -----------------------------------------------------------------------------
# Parameter init (deterministic, synthetic) + pure-JAX reference
# -----------------------------------------------------------------------------
def init_params(key, p):
    def lin(k, out_f, in_f):
        k1, k2 = jax.random.split(k)
        bound = 1.0 / np.sqrt(in_f)
        w = jax.random.uniform(k1, (out_f, in_f), jnp.float32, -bound, bound)
        b = jax.random.uniform(k2, (out_f,), jnp.float32, -bound, bound)
        return w, b

    keys = jax.random.split(key, 8)
    w12, b12 = lin(keys[0], p, 1)
    w11, b11 = lin(keys[1], p, p)
    w2, b2 = lin(keys[2], p, p)
    w4, b4 = lin(keys[3], p, 1)
    w3, b3 = lin(keys[4], p, p)
    w6, b6 = lin(keys[5], p, p)
    w7, b7 = lin(keys[6], p, p)
    w5, b5 = lin(keys[7], 2, 2 * p)

    torch_params = dict(w12=w12, b12=b12, w11=w11, b11=b11, w2=w2, b2=b2,
                        w4=w4, b4=b4, w3=w3, b3=b3, w6=w6, b6=b6,
                        w7=w7, b7=b7, w5=w5, b5=b5)
    w5t = w5.T  # (2p, 2)
    kernel_params = dict(
        w12_row=w12[:, 0].reshape(1, p), b12_row=b12.reshape(1, p),
        w11t=w11.T, b11_row=b11.reshape(1, p),
        w2t=w2.T, b2_row=b2.reshape(1, p),
        w4_row=w4[:, 0].reshape(1, p), b4_row=b4.reshape(1, p),
        w3t=w3.T, b3_row=b3.reshape(1, p),
        w6t=w6.T, b6_row=b6.reshape(1, p),
        w7t=w7.T, b7_row=b7.reshape(1, p),
        w5t_a=w5t[:p], w5t_b=w5t[p:], b5_row=b5.reshape(1, 2),
    )
    return torch_params, kernel_params


def ref_forward(E, Wg, adjF, adjG, Mu0, e, tp, T, n):
    Mu = Mu0
    for _ in range(T):
        t12 = jnp.maximum(E[..., None] * tp["w12"][:, 0] + tp["b12"], 0.0)
        theta11 = jnp.einsum("bij,bjik->bik", adjF, t12) / n
        theta11 = theta11 @ tp["w11"].T + tp["b11"]
        t2lin = Mu @ tp["w2"].T + tp["b2"]
        theta2 = jnp.einsum("bij,bjk->bik", adjG, t2lin) / n
        t4 = jnp.maximum(Wg[..., None] * tp["w4"][:, 0] + tp["b4"], 0.0)
        theta3 = jnp.einsum("bij,bjik->bik", adjG, t4) / n
        theta3 = theta3 @ tp["w3"].T + tp["b3"]
        Mu = jnp.maximum((theta11 + theta2 + theta3) / 3.0, 0.0)
    bt = E.shape[0]
    idx = jnp.arange(bt)
    mu_tmp = (Mu[idx, e[:, 0]] + Mu[idx, e[:, 1]]) / 2.0
    theta7 = mu_tmp @ tp["w7"].T + tp["b7"]
    theta6 = (Mu.sum(1) / n) @ tp["w6"].T + tp["b6"]
    theta67 = jnp.maximum(jnp.concatenate([theta6, theta7], axis=-1), 0.0)
    out = theta67 @ tp["w5"].T + tp["b5"]
    return out.reshape(bt, 1, 2)


# -----------------------------------------------------------------------------
if __name__ == "__main__":
    bt_size, n, p, T = 2, 8, 32, 3

    key = jax.random.PRNGKey(0)
    k_par, k_e, k_w, k_af, k_ag, k_mu, k_idx = jax.random.split(key, 7)

    torch_params, kernel_params = init_params(k_par, p)

    E = jax.random.normal(k_e, (bt_size, n, n), jnp.float32)
    Wg = jax.random.normal(k_w, (bt_size, n, n), jnp.float32)
    adjF = jax.random.bernoulli(k_af, 0.5, (bt_size, n, n)).astype(jnp.float32)
    adjG = jax.random.bernoulli(k_ag, 0.5, (bt_size, n, n)).astype(jnp.float32)
    # TODO(synk): torch forward overwrites Mu with torch.randn(bt, n, p); drawn here
    # deterministically with jax.random instead of an in-kernel RNG.
    Mu0 = jax.random.normal(k_mu, (bt_size, n, p), jnp.float32)
    e = jax.random.randint(k_idx, (bt_size, 2), 0, n, dtype=jnp.int32)

    out = graph_embedding_forward(E, Wg, adjF, adjG, Mu0, e, kernel_params, T)
    out = jax.block_until_ready(out)
    assert out.shape == (bt_size, 1, 2), out.shape

    ref = ref_forward(E, Wg, adjF, adjG, Mu0, e, torch_params, T, n)
    np.testing.assert_allclose(np.asarray(out), np.asarray(ref),
                               rtol=1e-4, atol=1e-4)
    print("KERNEL_OK")
</pallas_src>

<mosaic_0001>
module attributes {stable_mosaic.version = 11 : i64} {
  func.func @_fused_kernel(%arg0: i32, %arg1: memref<2x2xi32, #tpu.memory_space<smem>>, %arg2: memref<2x8x8xf32, #tpu.memory_space<vmem>>, %arg3: memref<2x8x8xf32, #tpu.memory_space<vmem>>, %arg4: memref<2x8x8xf32, #tpu.memory_space<vmem>>, %arg5: memref<2x8x8xf32, #tpu.memory_space<vmem>>, %arg6: memref<2x8x32xf32, #tpu.memory_space<vmem>>, %arg7: memref<1x32xf32, #tpu.memory_space<vmem>>, %arg8: memref<1x32xf32, #tpu.memory_space<vmem>>, %arg9: memref<32x32xf32, #tpu.memory_space<vmem>>, %arg10: memref<1x32xf32, #tpu.memory_space<vmem>>, %arg11: memref<32x32xf32, #tpu.memory_space<vmem>>, %arg12: memref<1x32xf32, #tpu.memory_space<vmem>>, %arg13: memref<1x32xf32, #tpu.memory_space<vmem>>, %arg14: memref<1x32xf32, #tpu.memory_space<vmem>>, %arg15: memref<32x32xf32, #tpu.memory_space<vmem>>, %arg16: memref<1x32xf32, #tpu.memory_space<vmem>>, %arg17: memref<32x32xf32, #tpu.memory_space<vmem>>, %arg18: memref<1x32xf32, #tpu.memory_space<vmem>>, %arg19: memref<32x32xf32, #tpu.memory_space<vmem>>, %arg20: memref<1x32xf32, #tpu.memory_space<vmem>>, %arg21: memref<32x2xf32, #tpu.memory_space<vmem>>, %arg22: memref<32x2xf32, #tpu.memory_space<vmem>>, %arg23: memref<1x2xf32, #tpu.memory_space<vmem>>, %arg24: memref<2x1x2xf32, #tpu.memory_space<vmem>>) attributes {dimension_semantics = [#tpu.dimension_semantics<parallel>], iteration_bounds = array<i64: 1>, scalar_prefetch = 1 : i64, scratch_operands = 0 : i64, tpu.core_type = #tpu.core_type<tc>, window_params = [{transform_indices = @transform_0, window_bounds = array<i64: 2, 8, 8>}, {transform_indices = @transform_1, window_bounds = array<i64: 2, 8, 8>}, {transform_indices = @transform_2, window_bounds = array<i64: 2, 8, 8>}, {transform_indices = @transform_3, window_bounds = array<i64: 2, 8, 8>}, {transform_indices = @transform_4, window_bounds = array<i64: 2, 8, 32>}, {pipeline_mode = #tpu.pipeline_mode<synchronous>, transform_indices = @transform_5, window_bounds = array<i64: 1, 32>}, {pipeline_mode = #tpu.pipeline_mode<synchronous>, transform_indices = @transform_6, window_bounds = array<i64: 1, 32>}, {pipeline_mode = #tpu.pipeline_mode<synchronous>, transform_indices = @transform_7, window_bounds = array<i64: 32, 32>}, {pipeline_mode = #tpu.pipeline_mode<synchronous>, transform_indices = @transform_8, window_bounds = array<i64: 1, 32>}, {pipeline_mode = #tpu.pipeline_mode<synchronous>, transform_indices = @transform_9, window_bounds = array<i64: 32, 32>}, {pipeline_mode = #tpu.pipeline_mode<synchronous>, transform_indices = @transform_10, window_bounds = array<i64: 1, 32>}, {pipeline_mode = #tpu.pipeline_mode<synchronous>, transform_indices = @transform_11, window_bounds = array<i64: 1, 32>}, {pipeline_mode = #tpu.pipeline_mode<synchronous>, transform_indices = @transform_12, window_bounds = array<i64: 1, 32>}, {pipeline_mode = #tpu.pipeline_mode<synchronous>, transform_indices = @transform_13, window_bounds = array<i64: 32, 32>}, {pipeline_mode = #tpu.pipeline_mode<synchronous>, transform_indices = @transform_14, window_bounds = array<i64: 1, 32>}, {pipeline_mode = #tpu.pipeline_mode<synchronous>, transform_indices = @transform_15, window_bounds = array<i64: 32, 32>}, {pipeline_mode = #tpu.pipeline_mode<synchronous>, transform_indices = @transform_16, window_bounds = array<i64: 1, 32>}, {pipeline_mode = #tpu.pipeline_mode<synchronous>, transform_indices = @transform_17, window_bounds = array<i64: 32, 32>}, {pipeline_mode = #tpu.pipeline_mode<synchronous>, transform_indices = @transform_18, window_bounds = array<i64: 1, 32>}, {pipeline_mode = #tpu.pipeline_mode<synchronous>, transform_indices = @transform_19, window_bounds = array<i64: 32, 2>}, {pipeline_mode = #tpu.pipeline_mode<synchronous>, transform_indices = @transform_20, window_bounds = array<i64: 32, 2>}, {pipeline_mode = #tpu.pipeline_mode<synchronous>, transform_indices = @transform_21, window_bounds = array<i64: 1, 2>}, {transform_indices = @transform_22, window_bounds = array<i64: 2, 1, 2>}]} {
    %c0 = arith.constant 0 : index
    %c0_0 = arith.constant 0 : index
    %c0_1 = arith.constant 0 : index
    %0 = vector.load %arg2[%c0, %c0_0, %c0_1] : memref<2x8x8xf32, #tpu.memory_space<vmem>>, vector<2x8x8xf32>
    %c0_2 = arith.constant 0 : index
    %c0_3 = arith.constant 0 : index
    %c0_4 = arith.constant 0 : index
    %1 = vector.load %arg3[%c0_2, %c0_3, %c0_4] : memref<2x8x8xf32, #tpu.memory_space<vmem>>, vector<2x8x8xf32>
    %c0_5 = arith.constant 0 : index
    %c0_6 = arith.constant 0 : index
    %c0_7 = arith.constant 0 : index
    %2 = vector.load %arg4[%c0_5, %c0_6, %c0_7] : memref<2x8x8xf32, #tpu.memory_space<vmem>>, vector<2x8x8xf32>
    %c0_8 = arith.constant 0 : index
    %c0_9 = arith.constant 0 : index
    %c0_10 = arith.constant 0 : index
    %3 = vector.load %arg5[%c0_8, %c0_9, %c0_10] : memref<2x8x8xf32, #tpu.memory_space<vmem>>, vector<2x8x8xf32>
    %c0_11 = arith.constant 0 : index
    %c0_12 = arith.constant 0 : index
    %4 = vector.load %arg7[%c0_11, %c0_12] : memref<1x32xf32, #tpu.memory_space<vmem>>, vector<1x32xf32>
    %c0_13 = arith.constant 0 : index
    %c0_14 = arith.constant 0 : index
    %5 = vector.load %arg8[%c0_13, %c0_14] : memref<1x32xf32, #tpu.memory_space<vmem>>, vector<1x32xf32>
    %c0_15 = arith.constant 0 : index
    %c0_16 = arith.constant 0 : index
    %6 = vector.load %arg13[%c0_15, %c0_16] : memref<1x32xf32, #tpu.memory_space<vmem>>, vector<1x32xf32>
    %c0_17 = arith.constant 0 : index
    %c0_18 = arith.constant 0 : index
    %7 = vector.load %arg14[%c0_17, %c0_18] : memref<1x32xf32, #tpu.memory_space<vmem>>, vector<1x32xf32>
    %c0_19 = arith.constant 0 : index
    %c0_20 = arith.constant 0 : index
    %8 = vector.load %arg11[%c0_19, %c0_20] : memref<32x32xf32, #tpu.memory_space<vmem>>, vector<32x32xf32>
    %c0_21 = arith.constant 0 : index
    %c0_22 = arith.constant 0 : index
    %9 = vector.load %arg12[%c0_21, %c0_22] : memref<1x32xf32, #tpu.memory_space<vmem>>, vector<1x32xf32>
    %10 = vector.extract_strided_slice %0 {offsets = [0, 0, 0], sizes = [1, 8, 8], strides = [1, 1, 1]} : vector<2x8x8xf32> to vector<1x8x8xf32>
    %11 = vector.shape_cast %10 : vector<1x8x8xf32> to vector<8x8xf32>
    %12 = tpu.transpose %11, [1, 0] : vector<8x8xf32> -> vector<8x8xf32>
    %13 = vector.shape_cast %12 : vector<8x8xf32> to vector<8x8x1xf32>
    %14 = vector.shape_cast %4 : vector<1x32xf32> to vector<32xf32>
    %15 = vector.shape_cast %14 : vector<32xf32> to vector<1x1x32xf32>
    %16 = vector.broadcast %13 : vector<8x8x1xf32> to vector<8x8x32xf32>
    %17 = vector.broadcast %15 : vector<1x1x32xf32> to vector<8x8x32xf32>
    %18 = arith.mulf %16, %17 : vector<8x8x32xf32>
    %19 = vector.shape_cast %5 : vector<1x32xf32> to vector<32xf32>
    %20 = vector.shape_cast %19 : vector<32xf32> to vector<1x1x32xf32>
    %21 = vector.broadcast %20 : vector<1x1x32xf32> to vector<8x8x32xf32>
    %22 = arith.addf %18, %21 : vector<8x8x32xf32>
    %cst = arith.constant 0.000000e+00 : f32
    %23 = vector.broadcast %cst : f32 to vector<8x8x32xf32>
    %24 = arith.maximumf %22, %23 : vector<8x8x32xf32>
    %25 = vector.extract_strided_slice %2 {offsets = [0, 0, 0], sizes = [1, 8, 8], strides = [1, 1, 1]} : vector<2x8x8xf32> to vector<1x8x8xf32>
    %26 = vector.shape_cast %25 : vector<1x8x8xf32> to vector<8x8xf32>
    %27 = vector.shape_cast %26 : vector<8x8xf32> to vector<8x8x1xf32>
    %28 = vector.broadcast %27 : vector<8x8x1xf32> to vector<8x8x32xf32>
    %29 = arith.mulf %28, %24 : vector<8x8x32xf32>
    %cst_23 = arith.constant dense<0.000000e+00> : vector<8x32xf32>
    %30 = vector.multi_reduction <add>, %29, %cst_23 [1] : vector<8x8x32xf32> to vector<8x32xf32>
    %31 = vector.extract_strided_slice %1 {offsets = [0, 0, 0], sizes = [1, 8, 8], strides = [1, 1, 1]} : vector<2x8x8xf32> to vector<1x8x8xf32>
    %32 = vector.shape_cast %31 : vector<1x8x8xf32> to vector<8x8xf32>
    %33 = tpu.transpose %32, [1, 0] : vector<8x8xf32> -> vector<8x8xf32>
    %34 = vector.shape_cast %33 : vector<8x8xf32> to vector<8x8x1xf32>
    %35 = vector.shape_cast %6 : vector<1x32xf32> to vector<32xf32>
    %36 = vector.shape_cast %35 : vector<32xf32> to vector<1x1x32xf32>
    %37 = vector.broadcast %34 : vector<8x8x1xf32> to vector<8x8x32xf32>
    %38 = vector.broadcast %36 : vector<1x1x32xf32> to vector<8x8x32xf32>
    %39 = arith.mulf %37, %38 : vector<8x8x32xf32>
    %40 = vector.shape_cast %7 : vector<1x32xf32> to vector<32xf32>
    %41 = vector.shape_cast %40 : vector<32xf32> to vector<1x1x32xf32>
    %42 = vector.broadcast %41 : vector<1x1x32xf32> to vector<8x8x32xf32>
    %43 = arith.addf %39, %42 : vector<8x8x32xf32>
    %cst_24 = arith.constant 0.000000e+00 : f32
    %44 = vector.broadcast %cst_24 : f32 to vector<8x8x32xf32>
    %45 = arith.maximumf %43, %44 : vector<8x8x32xf32>
    %46 = vector.extract_strided_slice %3 {offsets = [0, 0, 0], sizes = [1, 8, 8], strides = [1, 1, 1]} : vector<2x8x8xf32> to vector<1x8x8xf32>
    %47 = vector.shape_cast %46 : vector<1x8x8xf32> to vector<8x8xf32>
    %48 = vector.shape_cast %47 : vector<8x8xf32> to vector<8x8x1xf32>
    %49 = vector.broadcast %48 : vector<8x8x1xf32> to vector<8x8x32xf32>
    %50 = arith.mulf %49, %45 : vector<8x8x32xf32>
    %cst_25 = arith.constant dense<0.000000e+00> : vector<8x32xf32>
    %51 = vector.multi_reduction <add>, %50, %cst_25 [1] : vector<8x8x32xf32> to vector<8x32xf32>
    %52 = vector.extract_strided_slice %3 {offsets = [0, 0, 0], sizes = [1, 8, 8], strides = [1, 1, 1]} : vector<2x8x8xf32> to vector<1x8x8xf32>
    %53 = vector.shape_cast %52 : vector<1x8x8xf32> to vector<8x8xf32>
    %cst_26 = arith.constant dense<0.000000e+00> : vector<8xf32>
    %54 = vector.multi_reduction <add>, %53, %cst_26 [1] : vector<8x8xf32> to vector<8xf32>
    %55 = vector.shape_cast %54 : vector<8xf32> to vector<8x1xf32>
    %56 = vector.extract_strided_slice %0 {offsets = [1, 0, 0], sizes = [1, 8, 8], strides = [1, 1, 1]} : vector<2x8x8xf32> to vector<1x8x8xf32>
    %57 = vector.shape_cast %56 : vector<1x8x8xf32> to vector<8x8xf32>
    %58 = tpu.transpose %57, [1, 0] : vector<8x8xf32> -> vector<8x8xf32>
    %59 = vector.shape_cast %58 : vector<8x8xf32> to vector<8x8x1xf32>
    %60 = vector.shape_cast %4 : vector<1x32xf32> to vector<32xf32>
    %61 = vector.shape_cast %60 : vector<32xf32> to vector<1x1x32xf32>
    %62 = vector.broadcast %59 : vector<8x8x1xf32> to vector<8x8x32xf32>
    %63 = vector.broadcast %61 : vector<1x1x32xf32> to vector<8x8x32xf32>
    %64 = arith.mulf %62, %63 : vector<8x8x32xf32>
    %65 = vector.shape_cast %5 : vector<1x32xf32> to vector<32xf32>
    %66 = vector.shape_cast %65 : vector<32xf32> to vector<1x1x32xf32>
    %67 = vector.broadcast %66 : vector<1x1x32xf32> to vector<8x8x32xf32>
    %68 = arith.addf %64, %67 : vector<8x8x32xf32>
    %cst_27 = arith.constant 0.000000e+00 : f32
    %69 = vector.broadcast %cst_27 : f32 to vector<8x8x32xf32>
    %70 = arith.maximumf %68, %69 : vector<8x8x32xf32>
    %71 = vector.extract_strided_slice %2 {offsets = [1, 0, 0], sizes = [1, 8, 8], strides = [1, 1, 1]} : vector<2x8x8xf32> to vector<1x8x8xf32>
    %72 = vector.shape_cast %71 : vector<1x8x8xf32> to vector<8x8xf32>
    %73 = vector.shape_cast %72 : vector<8x8xf32> to vector<8x8x1xf32>
    %74 = vector.broadcast %73 : vector<8x8x1xf32> to vector<8x8x32xf32>
    %75 = arith.mulf %74, %70 : vector<8x8x32xf32>
    %cst_28 = arith.constant dense<0.000000e+00> : vector<8x32xf32>
    %76 = vector.multi_reduction <add>, %75, %cst_28 [1] : vector<8x8x32xf32> to vector<8x32xf32>
    %77 = vector.extract_strided_slice %1 {offsets = [1, 0, 0], sizes = [1, 8, 8], strides = [1, 1, 1]} : vector<2x8x8xf32> to vector<1x8x8xf32>
    %78 = vector.shape_cast %77 : vector<1x8x8xf32> to vector<8x8xf32>
    %79 = tpu.transpose %78, [1, 0] : vector<8x8xf32> -> vector<8x8xf32>
    %80 = vector.shape_cast %79 : vector<8x8xf32> to vector<8x8x1xf32>
    %81 = vector.shape_cast %6 : vector<1x32xf32> to vector<32xf32>
    %82 = vector.shape_cast %81 : vector<32xf32> to vector<1x1x32xf32>
    %83 = vector.broadcast %80 : vector<8x8x1xf32> to vector<8x8x32xf32>
    %84 = vector.broadcast %82 : vector<1x1x32xf32> to vector<8x8x32xf32>
    %85 = arith.mulf %83, %84 : vector<8x8x32xf32>
    %86 = vector.shape_cast %7 : vector<1x32xf32> to vector<32xf32>
    %87 = vector.shape_cast %86 : vector<32xf32> to vector<1x1x32xf32>
    %88 = vector.broadcast %87 : vector<1x1x32xf32> to vector<8x8x32xf32>
    %89 = arith.addf %85, %88 : vector<8x8x32xf32>
    %cst_29 = arith.constant 0.000000e+00 : f32
    %90 = vector.broadcast %cst_29 : f32 to vector<8x8x32xf32>
    %91 = arith.maximumf %89, %90 : vector<8x8x32xf32>
    %92 = vector.extract_strided_slice %3 {offsets = [1, 0, 0], sizes = [1, 8, 8], strides = [1, 1, 1]} : vector<2x8x8xf32> to vector<1x8x8xf32>
    %93 = vector.shape_cast %92 : vector<1x8x8xf32> to vector<8x8xf32>
    %94 = vector.shape_cast %93 : vector<8x8xf32> to vector<8x8x1xf32>
    %95 = vector.broadcast %94 : vector<8x8x1xf32> to vector<8x8x32xf32>
    %96 = arith.mulf %95, %91 : vector<8x8x32xf32>
    %cst_30 = arith.constant dense<0.000000e+00> : vector<8x32xf32>
    %97 = vector.multi_reduction <add>, %96, %cst_30 [1] : vector<8x8x32xf32> to vector<8x32xf32>
    %98 = vector.extract_strided_slice %3 {offsets = [1, 0, 0], sizes = [1, 8, 8], strides = [1, 1, 1]} : vector<2x8x8xf32> to vector<1x8x8xf32>
    %99 = vector.shape_cast %98 : vector<1x8x8xf32> to vector<8x8xf32>
    %cst_31 = arith.constant dense<0.000000e+00> : vector<8xf32>
    %100 = vector.multi_reduction <add>, %99, %cst_31 [1] : vector<8x8xf32> to vector<8xf32>
    %101 = vector.shape_cast %100 : vector<8xf32> to vector<8x1xf32>
    %102 = tpu.concatenate %30, %76 in 0 : vector<8x32xf32>, vector<8x32xf32> -> vector<16x32xf32>
    %cst_32 = arith.constant 1.250000e-01 : f32
    %103 = vector.broadcast %cst_32 : f32 to vector<16x32xf32>
    %104 = arith.mulf %102, %103 : vector<16x32xf32>
    %105 = tpu.concatenate %51, %97 in 0 : vector<8x32xf32>, vector<8x32xf32> -> vector<16x32xf32>
    %cst_33 = arith.constant 1.250000e-01 : f32
    %106 = vector.broadcast %cst_33 : f32 to vector<16x32xf32>
    %107 = arith.mulf %105, %106 : vector<16x32xf32>
    %108 = tpu.concatenate %55, %101 in 0 : vector<8x1xf32>, vector<8x1xf32> -> vector<16x1xf32>
    %cst_34 = arith.constant 1.250000e-01 : f32
    %109 = vector.broadcast %cst_34 : f32 to vector<16x1xf32>
    %110 = arith.mulf %108, %109 : vector<16x1xf32>
    %c0_35 = arith.constant 0 : index
    %c0_36 = arith.constant 0 : index
    %111 = vector.load %arg9[%c0_35, %c0_36] : memref<32x32xf32, #tpu.memory_space<vmem>>, vector<32x32xf32>
    %cst_37 = arith.constant dense<0.000000e+00> : vector<16x32xf32>
    %112 = tpu.matmul %104, %111, %cst_37 {dimension_numbers = #tpu.dot_dimension_numbers<[1], [0], [0], [1], [0, 0, 1, 1], [], []>} : vector<16x32xf32>, vector<32x32xf32>, vector<16x32xf32> -> vector<16x32xf32>
    %c0_38 = arith.constant 0 : index
    %c0_39 = arith.constant 0 : index
    %113 = vector.load %arg10[%c0_38, %c0_39] : memref<1x32xf32, #tpu.memory_space<vmem>>, vector<1x32xf32>
    %114 = vector.broadcast %113 : vector<1x32xf32> to vector<16x32xf32>
    %115 = arith.addf %112, %114 : vector<16x32xf32>
    %c0_40 = arith.constant 0 : index
    %c0_41 = arith.constant 0 : index
    %116 = vector.load %arg15[%c0_40, %c0_41] : memref<32x32xf32, #tpu.memory_space<vmem>>, vector<32x32xf32>
    %cst_42 = arith.constant dense<0.000000e+00> : vector<16x32xf32>
    %117 = tpu.matmul %107, %116, %cst_42 {dimension_numbers = #tpu.dot_dimension_numbers<[1], [0], [0], [1], [0, 0, 1, 1], [], []>} : vector<16x32xf32>, vector<32x32xf32>, vector<16x32xf32> -> vector<16x32xf32>
    %c0_43 = arith.constant 0 : index
    %c0_44 = arith.constant 0 : index
    %118 = vector.load %arg16[%c0_43, %c0_44] : memref<1x32xf32, #tpu.memory_space<vmem>>, vector<1x32xf32>
    %119 = vector.broadcast %118 : vector<1x32xf32> to vector<16x32xf32>
    %120 = arith.addf %117, %119 : vector<16x32xf32>
    %121 = arith.addf %115, %120 : vector<16x32xf32>
    %122 = vector.broadcast %110 : vector<16x1xf32> to vector<16x32xf32>
    %123 = vector.broadcast %9 : vector<1x32xf32> to vector<16x32xf32>
    %124 = arith.mulf %122, %123 : vector<16x32xf32>
    %125 = arith.addf %121, %124 : vector<16x32xf32>
    %cst_45 = arith.constant 0.333333343 : f32
    %126 = vector.broadcast %cst_45 : f32 to vector<16x32xf32>
    %127 = arith.mulf %125, %126 : vector<16x32xf32>
    %cst_46 = arith.constant 0.0416666679 : f32
    %128 = vector.broadcast %cst_46 : f32 to vector<32x32xf32>
    %129 = arith.mulf %8, %128 : vector<32x32xf32>
    %c0_47 = arith.constant 0 : index
    %c0_48 = arith.constant 0 : index
    %c0_49 = arith.constant 0 : index
    %130 = vector.load %arg6[%c0_47, %c0_48, %c0_49] : memref<2x8x32xf32, #tpu.memory_space<vmem>>, vector<2x8x32xf32>
    %131 = vector.shape_cast %130 : vector<2x8x32xf32> to vector<16x32xf32>
    %c0_i32 = arith.constant 0 : i32
    %cst_50 = arith.constant dense<0.000000e+00> : vector<16x32xf32>
    %132 = tpu.matmul %131, %129, %cst_50 {dimension_numbers = #tpu.dot_dimension_numbers<[1], [0], [0], [1], [0, 0, 1, 1], [], []>} : vector<16x32xf32>, vector<32x32xf32>, vector<16x32xf32> -> vector<16x32xf32>
    %133 = vector.shape_cast %132 : vector<16x32xf32> to vector<2x8x32xf32>
    "tpu.trace_start"() <{level = 10 : i32, message = "bij,bjk->bik"}> : () -> ()
    %cst_51 = arith.constant dense<0.000000e+00> : vector<2x8x32xf32>
    %134 = tpu.matmul %3, %133, %cst_51 {dimension_numbers = #tpu.dot_dimension_numbers<[2], [1], [1], [2], [0, 0, 0, 1, 1, 2], [0], [0]>} : vector<2x8x8xf32>, vector<2x8x32xf32>, vector<2x8x32xf32> -> vector<2x8x32xf32>
    "tpu.trace_stop"() : () -> ()
    %135 = vector.shape_cast %134 : vector<2x8x32xf32> to vector<16x32xf32>
    %136 = arith.addf %127, %135 : vector<16x32xf32>
    %cst_52 = arith.constant 0.000000e+00 : f32
    %137 = vector.broadcast %cst_52 : f32 to vector<16x32xf32>
    %138 = arith.maximumf %136, %137 : vector<16x32xf32>
    %c1_i32 = arith.constant 1 : i32
    %cst_53 = arith.constant dense<0.000000e+00> : vector<16x32xf32>
    %139 = tpu.matmul %138, %129, %cst_53 {dimension_numbers = #tpu.dot_dimension_numbers<[1], [0], [0], [1], [0, 0, 1, 1], [], []>} : vector<16x32xf32>, vector<32x32xf32>, vector<16x32xf32> -> vector<16x32xf32>
    %140 = vector.shape_cast %139 : vector<16x32xf32> to vector<2x8x32xf32>
    "tpu.trace_start"() <{level = 10 : i32, message = "bij,bjk->bik"}> : () -> ()
    %cst_54 = arith.constant dense<0.000000e+00> : vector<2x8x32xf32>
    %141 = tpu.matmul %3, %140, %cst_54 {dimension_numbers = #tpu.dot_dimension_numbers<[2], [1], [1], [2], [0, 0, 0, 1, 1, 2], [0], [0]>} : vector<2x8x8xf32>, vector<2x8x32xf32>, vector<2x8x32xf32> -> vector<2x8x32xf32>
    "tpu.trace_stop"() : () -> ()
    %142 = vector.shape_cast %141 : vector<2x8x32xf32> to vector<16x32xf32>
    %143 = arith.addf %127, %142 : vector<16x32xf32>
    %cst_55 = arith.constant 0.000000e+00 : f32
    %144 = vector.broadcast %cst_55 : f32 to vector<16x32xf32>
    %145 = arith.maximumf %143, %144 : vector<16x32xf32>
    %c2_i32 = arith.constant 2 : i32
    %cst_56 = arith.constant dense<0.000000e+00> : vector<16x32xf32>
    %146 = tpu.matmul %145, %129, %cst_56 {dimension_numbers = #tpu.dot_dimension_numbers<[1], [0], [0], [1], [0, 0, 1, 1], [], []>} : vector<16x32xf32>, vector<32x32xf32>, vector<16x32xf32> -> vector<16x32xf32>
    %147 = vector.shape_cast %146 : vector<16x32xf32> to vector<2x8x32xf32>
    "tpu.trace_start"() <{level = 10 : i32, message = "bij,bjk->bik"}> : () -> ()
    %cst_57 = arith.constant dense<0.000000e+00> : vector<2x8x32xf32>
    %148 = tpu.matmul %3, %147, %cst_57 {dimension_numbers = #tpu.dot_dimension_numbers<[2], [1], [1], [2], [0, 0, 0, 1, 1, 2], [0], [0]>} : vector<2x8x8xf32>, vector<2x8x32xf32>, vector<2x8x32xf32> -> vector<2x8x32xf32>
    "tpu.trace_stop"() : () -> ()
    %149 = vector.shape_cast %148 : vector<2x8x32xf32> to vector<16x32xf32>
    %150 = arith.addf %127, %149 : vector<16x32xf32>
    %cst_58 = arith.constant 0.000000e+00 : f32
    %151 = vector.broadcast %cst_58 : f32 to vector<16x32xf32>
    %152 = arith.maximumf %150, %151 : vector<16x32xf32>
    %c2_i32_59 = arith.constant 2 : i32
    %153 = arith.muli %arg0, %c2_i32_59 : i32
    %154 = tpu.iota {dimensions = array<i32: 0>} : vector<8x1xi32>
    %155 = vector.extract_strided_slice %152 {offsets = [0, 0], sizes = [8, 32], strides = [1, 1]} : vector<16x32xf32> to vector<8x32xf32>
    %c0_i32_60 = arith.constant 0 : i32
    %156 = arith.addi %153, %c0_i32_60 : i32
    %157 = arith.index_cast %156 : i32 to index
    %c0_61 = arith.constant 0 : index
    %158 = memref.load %arg1[%157, %c0_61] : memref<2x2xi32, #tpu.memory_space<smem>>
    %c0_i32_62 = arith.constant 0 : i32
    %159 = arith.addi %153, %c0_i32_62 : i32
    %160 = arith.index_cast %159 : i32 to index
    %c1 = arith.constant 1 : index
    %161 = memref.load %arg1[%160, %c1] : memref<2x2xi32, #tpu.memory_space<smem>>
    %162 = vector.broadcast %158 : i32 to vector<8x1xi32>
    %163 = arith.cmpi eq, %154, %162 : vector<8x1xi32>
    %164 = arith.extui %163 : vector<8x1xi1> to vector<8x1xi32>
    %165 = arith.sitofp %164 : vector<8x1xi32> to vector<8x1xf32>
    %166 = vector.broadcast %161 : i32 to vector<8x1xi32>
    %167 = arith.cmpi eq, %154, %166 : vector<8x1xi32>
    %168 = arith.extui %167 : vector<8x1xi1> to vector<8x1xi32>
    %169 = arith.sitofp %168 : vector<8x1xi32> to vector<8x1xf32>
    %170 = arith.addf %165, %169 : vector<8x1xf32>
    %cst_63 = arith.constant 5.000000e-01 : f32
    %171 = vector.broadcast %cst_63 : f32 to vector<8x1xf32>
    %172 = arith.mulf %170, %171 : vector<8x1xf32>
    %173 = vector.broadcast %172 : vector<8x1xf32> to vector<8x32xf32>
    %174 = arith.mulf %173, %155 : vector<8x32xf32>
    %cst_64 = arith.constant dense<0.000000e+00> : vector<32xf32>
    %175 = vector.multi_reduction <add>, %174, %cst_64 [0] : vector<8x32xf32> to vector<32xf32>
    %176 = vector.shape_cast %175 : vector<32xf32> to vector<1x32xf32>
    %cst_65 = arith.constant dense<0.000000e+00> : vector<32xf32>
    %177 = vector.multi_reduction <add>, %155, %cst_65 [0] : vector<8x32xf32> to vector<32xf32>
    %178 = vector.shape_cast %177 : vector<32xf32> to vector<1x32xf32>
    %cst_66 = arith.constant 1.250000e-01 : f32
    %179 = vector.broadcast %cst_66 : f32 to vector<1x32xf32>
    %180 = arith.mulf %178, %179 : vector<1x32xf32>
    %181 = vector.extract_strided_slice %152 {offsets = [8, 0], sizes = [8, 32], strides = [1, 1]} : vector<16x32xf32> to vector<8x32xf32>
    %c1_i32_67 = arith.constant 1 : i32
    %182 = arith.addi %153, %c1_i32_67 : i32
    %183 = arith.index_cast %182 : i32 to index
    %c0_68 = arith.constant 0 : index
    %184 = memref.load %arg1[%183, %c0_68] : memref<2x2xi32, #tpu.memory_space<smem>>
    %c1_i32_69 = arith.constant 1 : i32
    %185 = arith.addi %153, %c1_i32_69 : i32
    %186 = arith.index_cast %185 : i32 to index
    %c1_70 = arith.constant 1 : index
    %187 = memref.load %arg1[%186, %c1_70] : memref<2x2xi32, #tpu.memory_space<smem>>
    %188 = vector.broadcast %184 : i32 to vector<8x1xi32>
    %189 = arith.cmpi eq, %154, %188 : vector<8x1xi32>
    %190 = arith.extui %189 : vector<8x1xi1> to vector<8x1xi32>
    %191 = arith.sitofp %190 : vector<8x1xi32> to vector<8x1xf32>
    %192 = vector.broadcast %187 : i32 to vector<8x1xi32>
    %193 = arith.cmpi eq, %154, %192 : vector<8x1xi32>
    %194 = arith.extui %193 : vector<8x1xi1> to vector<8x1xi32>
    %195 = arith.sitofp %194 : vector<8x1xi32> to vector<8x1xf32>
    %196 = arith.addf %191, %195 : vector<8x1xf32>
    %cst_71 = arith.constant 5.000000e-01 : f32
    %197 = vector.broadcast %cst_71 : f32 to vector<8x1xf32>
    %198 = arith.mulf %196, %197 : vector<8x1xf32>
    %199 = vector.broadcast %198 : vector<8x1xf32> to vector<8x32xf32>
    %200 = arith.mulf %199, %181 : vector<8x32xf32>
    %cst_72 = arith.constant dense<0.000000e+00> : vector<32xf32>
    %201 = vector.multi_reduction <add>, %200, %cst_72 [0] : vector<8x32xf32> to vector<32xf32>
    %202 = vector.shape_cast %201 : vector<32xf32> to vector<1x32xf32>
    %cst_73 = arith.constant dense<0.000000e+00> : vector<32xf32>
    %203 = vector.multi_reduction <add>, %181, %cst_73 [0] : vector<8x32xf32> to vector<32xf32>
    %204 = vector.shape_cast %203 : vector<32xf32> to vector<1x32xf32>
    %cst_74 = arith.constant 1.250000e-01 : f32
    %205 = vector.broadcast %cst_74 : f32 to vector<1x32xf32>
    %206 = arith.mulf %204, %205 : vector<1x32xf32>
    %207 = tpu.concatenate %176, %202 in 0 : vector<1x32xf32>, vector<1x32xf32> -> vector<2x32xf32>
    %208 = tpu.concatenate %180, %206 in 0 : vector<1x32xf32>, vector<1x32xf32> -> vector<2x32xf32>
    %c0_75 = arith.constant 0 : index
    %c0_76 = arith.constant 0 : index
    %209 = vector.load %arg17[%c0_75, %c0_76] : memref<32x32xf32, #tpu.memory_space<vmem>>, vector<32x32xf32>
    %cst_77 = arith.constant dense<0.000000e+00> : vector<2x32xf32>
    %210 = tpu.matmul %207, %209, %cst_77 {dimension_numbers = #tpu.dot_dimension_numbers<[1], [0], [0], [1], [0, 0, 1, 1], [], []>} : vector<2x32xf32>, vector<32x32xf32>, vector<2x32xf32> -> vector<2x32xf32>
    %c0_78 = arith.constant 0 : index
    %c0_79 = arith.constant 0 : index
    %211 = vector.load %arg18[%c0_78, %c0_79] : memref<1x32xf32, #tpu.memory_space<vmem>>, vector<1x32xf32>
    %212 = vector.broadcast %211 : vector<1x32xf32> to vector<2x32xf32>
    %213 = arith.addf %210, %212 : vector<2x32xf32>
    %c0_80 = arith.constant 0 : index
    %c0_81 = arith.constant 0 : index
    %214 = vector.load %arg19[%c0_80, %c0_81] : memref<32x32xf32, #tpu.memory_space<vmem>>, vector<32x32xf32>
    %cst_82 = arith.constant dense<0.000000e+00> : vector<2x32xf32>
    %215 = tpu.matmul %208, %214, %cst_82 {dimension_numbers = #tpu.dot_dimension_numbers<[1], [0], [0], [1], [0, 0, 1, 1], [], []>} : vector<2x32xf32>, vector<32x32xf32>, vector<2x32xf32> -> vector<2x32xf32>
    %c0_83 = arith.constant 0 : index
    %c0_84 = arith.constant 0 : index
    %216 = vector.load %arg20[%c0_83, %c0_84] : memref<1x32xf32, #tpu.memory_space<vmem>>, vector<1x32xf32>
    %217 = vector.broadcast %216 : vector<1x32xf32> to vector<2x32xf32>
    %218 = arith.addf %215, %217 : vector<2x32xf32>
    %cst_85 = arith.constant 0.000000e+00 : f32
    %219 = vector.broadcast %cst_85 : f32 to vector<2x32xf32>
    %220 = arith.maximumf %218, %219 : vector<2x32xf32>
    %c0_86 = arith.constant 0 : index
    %c0_87 = arith.constant 0 : index
    %221 = vector.load %arg21[%c0_86, %c0_87] : memref<32x2xf32, #tpu.memory_space<vmem>>, vector<32x2xf32>
    %cst_88 = arith.constant dense<0.000000e+00> : vector<2x2xf32>
    %222 = tpu.matmul %220, %221, %cst_88 {dimension_numbers = #tpu.dot_dimension_numbers<[1], [0], [0], [1], [0, 0, 1, 1], [], []>} : vector<2x32xf32>, vector<32x2xf32>, vector<2x2xf32> -> vector<2x2xf32>
    %cst_89 = arith.constant 0.000000e+00 : f32
    %223 = vector.broadcast %cst_89 : f32 to vector<2x32xf32>
    %224 = arith.maximumf %213, %223 : vector<2x32xf32>
    %c0_90 = arith.constant 0 : index
    %c0_91 = arith.constant 0 : index
    %225 = vector.load %arg22[%c0_90, %c0_91] : memref<32x2xf32, #tpu.memory_space<vmem>>, vector<32x2xf32>
    %cst_92 = arith.constant dense<0.000000e+00> : vector<2x2xf32>
    %226 = tpu.matmul %224, %225, %cst_92 {dimension_numbers = #tpu.dot_dimension_numbers<[1], [0], [0], [1], [0, 0, 1, 1], [], []>} : vector<2x32xf32>, vector<32x2xf32>, vector<2x2xf32> -> vector<2x2xf32>
    %227 = arith.addf %222, %226 : vector<2x2xf32>
    %c0_93 = arith.constant 0 : index
    %c0_94 = arith.constant 0 : index
    %228 = vector.load %arg23[%c0_93, %c0_94] : memref<1x2xf32, #tpu.memory_space<vmem>>, vector<1x2xf32>
    %229 = vector.broadcast %228 : vector<1x2xf32> to vector<2x2xf32>
    %230 = arith.addf %227, %229 : vector<2x2xf32>
    %231 = vector.extract_strided_slice %230 {offsets = [0, 0], sizes = [1, 2], strides = [1, 1]} : vector<2x2xf32> to vector<1x2xf32>
    %c0_95 = arith.constant 0 : index
    %c0_96 = arith.constant 0 : index
    %c0_97 = arith.constant 0 : index
    %232 = vector.load %arg24[%c0_95, %c0_96, %c0_97] : memref<2x1x2xf32, #tpu.memory_space<vmem>>, vector<1x1x2xf32>
    %233 = vector.shape_cast %232 : vector<1x1x2xf32> to vector<1x2xf32>
    %234 = vector.shape_cast %231 : vector<1x2xf32> to vector<1x1x2xf32>
    tpu.vector_store %arg24[%c0_95, %c0_96, %c0_97], %234 {strides = array<i32>} : memref<2x1x2xf32, #tpu.memory_space<vmem>>, vector<1x1x2xf32>,
    %235 = vector.extract_strided_slice %230 {offsets = [1, 0], sizes = [1, 2], strides = [1, 1]} : vector<2x2xf32> to vector<1x2xf32>
    %c1_98 = arith.constant 1 : index
    %c0_99 = arith.constant 0 : index
    %c0_100 = arith.constant 0 : index
    %236 = vector.load %arg24[%c1_98, %c0_99, %c0_100] : memref<2x1x2xf32, #tpu.memory_space<vmem>>, vector<1x1x2xf32>
    %237 = vector.shape_cast %236 : vector<1x1x2xf32> to vector<1x2xf32>
    %238 = vector.shape_cast %235 : vector<1x2xf32> to vector<1x1x2xf32>
    tpu.vector_store %arg24[%c1_98, %c0_99, %c0_100], %238 {strides = array<i32>} : memref<2x1x2xf32, #tpu.memory_space<vmem>>, vector<1x1x2xf32>,
    return
  }
  func.func @transform_0(%arg0: i32, %arg1: memref<2x2xi32, #tpu.memory_space<smem>>) -> (i32, i32, i32) {
    %c0_i32 = arith.constant 0 : i32
    %c0_i32_0 = arith.constant 0 : i32
    %c0_i32_1 = arith.constant 0 : i32
    return %arg0, %c0_i32, %c0_i32_0 : i32, i32, i32
  }
  func.func @transform_1(%arg0: i32, %arg1: memref<2x2xi32, #tpu.memory_space<smem>>) -> (i32, i32, i32) {
    %c0_i32 = arith.constant 0 : i32
    %c0_i32_0 = arith.constant 0 : i32
    %c0_i32_1 = arith.constant 0 : i32
    return %arg0, %c0_i32, %c0_i32_0 : i32, i32, i32
  }
  func.func @transform_2(%arg0: i32, %arg1: memref<2x2xi32, #tpu.memory_space<smem>>) -> (i32, i32, i32) {
    %c0_i32 = arith.constant 0 : i32
    %c0_i32_0 = arith.constant 0 : i32
    %c0_i32_1 = arith.constant 0 : i32
    return %arg0, %c0_i32, %c0_i32_0 : i32, i32, i32
  }
  func.func @transform_3(%arg0: i32, %arg1: memref<2x2xi32, #tpu.memory_space<smem>>) -> (i32, i32, i32) {
    %c0_i32 = arith.constant 0 : i32
    %c0_i32_0 = arith.constant 0 : i32
    %c0_i32_1 = arith.constant 0 : i32
    return %arg0, %c0_i32, %c0_i32_0 : i32, i32, i32
  }
  func.func @transform_4(%arg0: i32, %arg1: memref<2x2xi32, #tpu.memory_space<smem>>) -> (i32, i32, i32) {
    %c0_i32 = arith.constant 0 : i32
    %c0_i32_0 = arith.constant 0 : i32
    %c0_i32_1 = arith.constant 0 : i32
    return %arg0, %c0_i32, %c0_i32_0 : i32, i32, i32
  }
  func.func @transform_5(%arg0: i32, %arg1: memref<2x2xi32, #tpu.memory_space<smem>>) -> (i32, i32) {
    %c0_i32 = arith.constant 0 : i32
    %c0_i32_0 = arith.constant 0 : i32
    %c0_i32_1 = arith.constant 0 : i32
    return %c0_i32, %c0_i32_0 : i32, i32
  }
  func.func @transform_6(%arg0: i32, %arg1: memref<2x2xi32, #tpu.memory_space<smem>>) -> (i32, i32) {
    %c0_i32 = arith.constant 0 : i32
    %c0_i32_0 = arith.constant 0 : i32
    %c0_i32_1 = arith.constant 0 : i32
    return %c0_i32, %c0_i32_0 : i32, i32
  }
  func.func @transform_7(%arg0: i32, %arg1: memref<2x2xi32, #tpu.memory_space<smem>>) -> (i32, i32) {
    %c0_i32 = arith.constant 0 : i32
    %c0_i32_0 = arith.constant 0 : i32
    %c0_i32_1 = arith.constant 0 : i32
    return %c0_i32, %c0_i32_0 : i32, i32
  }
  func.func @transform_8(%arg0: i32, %arg1: memref<2x2xi32, #tpu.memory_space<smem>>) -> (i32, i32) {
    %c0_i32 = arith.constant 0 : i32
    %c0_i32_0 = arith.constant 0 : i32
    %c0_i32_1 = arith.constant 0 : i32
    return %c0_i32, %c0_i32_0 : i32, i32
  }
  func.func @transform_9(%arg0: i32, %arg1: memref<2x2xi32, #tpu.memory_space<smem>>) -> (i32, i32) {
    %c0_i32 = arith.constant 0 : i32
    %c0_i32_0 = arith.constant 0 : i32
    %c0_i32_1 = arith.constant 0 : i32
    return %c0_i32, %c0_i32_0 : i32, i32
  }
  func.func @transform_10(%arg0: i32, %arg1: memref<2x2xi32, #tpu.memory_space<smem>>) -> (i32, i32) {
    %c0_i32 = arith.constant 0 : i32
    %c0_i32_0 = arith.constant 0 : i32
    %c0_i32_1 = arith.constant 0 : i32
    return %c0_i32, %c0_i32_0 : i32, i32
  }
  func.func @transform_11(%arg0: i32, %arg1: memref<2x2xi32, #tpu.memory_space<smem>>) -> (i32, i32) {
    %c0_i32 = arith.constant 0 : i32
    %c0_i32_0 = arith.constant 0 : i32
    %c0_i32_1 = arith.constant 0 : i32
    return %c0_i32, %c0_i32_0 : i32, i32
  }
  func.func @transform_12(%arg0: i32, %arg1: memref<2x2xi32, #tpu.memory_space<smem>>) -> (i32, i32) {
    %c0_i32 = arith.constant 0 : i32
    %c0_i32_0 = arith.constant 0 : i32
    %c0_i32_1 = arith.constant 0 : i32
    return %c0_i32, %c0_i32_0 : i32, i32
  }
  func.func @transform_13(%arg0: i32, %arg1: memref<2x2xi32, #tpu.memory_space<smem>>) -> (i32, i32) {
    %c0_i32 = arith.constant 0 : i32
    %c0_i32_0 = arith.constant 0 : i32
    %c0_i32_1 = arith.constant 0 : i32
    return %c0_i32, %c0_i32_0 : i32, i32
  }
  func.func @transform_14(%arg0: i32, %arg1: memref<2x2xi32, #tpu.memory_space<smem>>) -> (i32, i32) {
    %c0_i32 = arith.constant 0 : i32
    %c0_i32_0 = arith.constant 0 : i32
    %c0_i32_1 = arith.constant 0 : i32
    return %c0_i32, %c0_i32_0 : i32, i32
  }
  func.func @transform_15(%arg0: i32, %arg1: memref<2x2xi32, #tpu.memory_space<smem>>) -> (i32, i32) {
    %c0_i32 = arith.constant 0 : i32
    %c0_i32_0 = arith.constant 0 : i32
    %c0_i32_1 = arith.constant 0 : i32
    return %c0_i32, %c0_i32_0 : i32, i32
  }
  func.func @transform_16(%arg0: i32, %arg1: memref<2x2xi32, #tpu.memory_space<smem>>) -> (i32, i32) {
    %c0_i32 = arith.constant 0 : i32
    %c0_i32_0 = arith.constant 0 : i32
    %c0_i32_1 = arith.constant 0 : i32
    return %c0_i32, %c0_i32_0 : i32, i32
  }
  func.func @transform_17(%arg0: i32, %arg1: memref<2x2xi32, #tpu.memory_space<smem>>) -> (i32, i32) {
    %c0_i32 = arith.constant 0 : i32
    %c0_i32_0 = arith.constant 0 : i32
    %c0_i32_1 = arith.constant 0 : i32
    return %c0_i32, %c0_i32_0 : i32, i32
  }
  func.func @transform_18(%arg0: i32, %arg1: memref<2x2xi32, #tpu.memory_space<smem>>) -> (i32, i32) {
    %c0_i32 = arith.constant 0 : i32
    %c0_i32_0 = arith.constant 0 : i32
    %c0_i32_1 = arith.constant 0 : i32
    return %c0_i32, %c0_i32_0 : i32, i32
  }
  func.func @transform_19(%arg0: i32, %arg1: memref<2x2xi32, #tpu.memory_space<smem>>) -> (i32, i32) {
    %c0_i32 = arith.constant 0 : i32
    %c0_i32_0 = arith.constant 0 : i32
    %c0_i32_1 = arith.constant 0 : i32
    return %c0_i32, %c0_i32_0 : i32, i32
  }
  func.func @transform_20(%arg0: i32, %arg1: memref<2x2xi32, #tpu.memory_space<smem>>) -> (i32, i32) {
    %c0_i32 = arith.constant 0 : i32
    %c0_i32_0 = arith.constant 0 : i32
    %c0_i32_1 = arith.constant 0 : i32
    return %c0_i32, %c0_i32_0 : i32, i32
  }
  func.func @transform_21(%arg0: i32, %arg1: memref<2x2xi32, #tpu.memory_space<smem>>) -> (i32, i32) {
    %c0_i32 = arith.constant 0 : i32
    %c0_i32_0 = arith.constant 0 : i32
    %c0_i32_1 = arith.constant 0 : i32
    return %c0_i32, %c0_i32_0 : i32, i32
  }
  func.func @transform_22(%arg0: i32, %arg1: memref<2x2xi32, #tpu.memory_space<smem>>) -> (i32, i32, i32) {
    %c0_i32 = arith.constant 0 : i32
    %c0_i32_0 = arith.constant 0 : i32
    %c0_i32_1 = arith.constant 0 : i32
    return %arg0, %c0_i32, %c0_i32_0 : i32, i32, i32
  }
}

</mosaic_0001>

<bundles_post_ra>
// kernel: graph_embedding_forward.1
= control target key start
LH: loop header
LB: loop body
LE: loop exit
PB: predicated region body
PF: predicated region fallthrough
CT: control target
= control target key end

     0   :  { %s2173_s25 = smov [#allocation3]   ;;  %s2832_s0 = inlined_call_operand.vmem [shape: s32[2,2], index: 0, kind: input, shape index: {}]   ;;  %s2833_s1 = inlined_call_operand.hbm [shape: f32[2,8,8], index: 1, kind: input, shape index: {}]   ;;  %s2834_s2 = inlined_call_operand.hbm [shape: f32[2,8,8], index: 2, kind: input, shape index: {}]   ;;  %s2835_s3 = inlined_call_operand.hbm [shape: f32[2,8,8], index: 3, kind: input, shape index: {}]   ;;  %s2836_s4 = inlined_call_operand.hbm [shape: f32[2,8,8], index: 4, kind: input, shape index: {}]   ;;  %s2837_s5 = inlined_call_operand.hbm [shape: f32[2,8,32], index: 5, kind: input, shape index: {}]   ;;  %s2838_s6 = inlined_call_operand.vmem [shape: f32[1,32], index: 6, kind: input, shape index: {}]   ;;  %s2839_s7 = inlined_call_operand.vmem [shape: f32[1,32], index: 7, kind: input, shape index: {}]   ;;  %s2840_s8 = inlined_call_operand.vmem [shape: f32[32,32], index: 8, kind: input, shape index: {}]   ;;  %s2841_s9 = inlined_call_operand.vmem [shape: f32[1,32], index: 9, kind: input, shape index: {}]   ;;  %s2842_s10 = inlined_call_operand.vmem [shape: f32[32,32], index: 10, kind: input, shape index: {}]   ;;  %s2843_s11 = inlined_call_operand.vmem [shape: f32[1,32], index: 11, kind: input, shape index: {}]   ;;  %s2844_s12 = inlined_call_operand.vmem [shape: f32[1,32], index: 12, kind: input, shape index: {}]   ;;  %s2845_s13 = inlined_call_operand.vmem [shape: f32[1,32], index: 13, kind: input, shape index: {}]   ;;  %s2846_s14 = inlined_call_operand.hbm [shape: f32[32,32], index: 14, kind: input, shape index: {}]   ;;  %s2847_s15 = inlined_call_operand.hbm [shape: f32[1,32], index: 15, kind: input, shape index: {}]   ;;  %s2848_s16 = inlined_call_operand.hbm [shape: f32[32,32], index: 16, kind: input, shape index: {}]   ;;  %s2849_s17 = inlined_call_operand.vmem [shape: f32[1,32], index: 17, kind: input, shape index: {}]   ;;  %s2850_s18 = inlined_call_operand.hbm [shape: f32[32,32], index: 18, kind: input, shape index: {}]   ;;  %s2851_s19 = inlined_call_operand.vmem [shape: f32[1,32], index: 19, kind: input, shape index: {}]   ;;  %s2852_s20 = inlined_call_operand.vmem [shape: f32[32,2], index: 20, kind: input, shape index: {}]   ;;  %s2853_s21 = inlined_call_operand.vmem [shape: f32[32,2], index: 21, kind: input, shape index: {}]   ;;  %s2854_s22 = inlined_call_operand.hbm [shape: f32[1,2], index: 22, kind: input, shape index: {}]   ;;  %s2855_s23 = inlined_call_operand.hbm [shape: f32[2,1,2], index: 23, kind: output, shape index: {}]  }
   0x1   :  { %2856 = sst [smem:[#allocation30_spill]] %s2832_s0 }
   0x2   :  { %2857 = sst [smem:[#allocation31_spill]] %s2833_s1 }
   0x3   :  { %2858 = sst [smem:[#allocation32_spill]] %s2834_s2 }
   0x4   :  { %2859 = sst [smem:[#allocation33_spill]] %s2835_s3 }
   0x5   :  { %2860 = sst [smem:[#allocation34_spill]] %s2836_s4 }
   0x6   :  { %2861 = sst [smem:[#allocation35_spill]] %s2837_s5 }
   0x7   :  { %2862 = sst [smem:[#allocation36_spill]] %s2838_s6 }
   0x8   :  { %2863 = sst [smem:[#allocation37_spill]] %s2839_s7 }
   0x9   :  { %2864 = sst [smem:[#allocation38_spill]] %s2849_s17 }
   0xa   :  { %s2865_s24 = sld [smem:[#allocation30_spill]] }
  0x10   :  { %s29_s17 = sshll.u32 %s2865_s24, 4  ;;  %s30_s17 = int_to_ptr.vmem [resolvable:$true] %s29_s17 }
  0x11   :  { %32 = dma.vmem_to_smem %s30_s17, 32, %s2173_s25, [#allocation2] }
  0x12   :  { %2157 = dma.done.wait [#allocation2], 32 }
  0x13   :  { %2158 = vsyncadd [#allocation2], 4294967264 }
  0x14   :  { %35 = sfence }
  0x15   :  { %36 = vsyncpa [#allocation5], 0 }
  0x16   :  { %37 = vsyncpa [#allocation8], 0 }
  0x17   :  { %38 = vsyncpa [#allocation11], 0 }
  0x18   :  { %39 = vsyncpa [#allocation14], 0 }
  0x19   :  { %40 = vsyncpa [#allocation17], 0 }
  0x1a   :  { %41 = vsyncpa [#allocation20], 0 }
  0x1b   :  { %42 = vsyncpa [#allocation6], 0  ;;  %s2866_s26 = sld [smem:[#allocation32_spill]]  ;;  %s2174_s6 = smov [#allocation7]  }
  0x1c   :  { %s62_s27 = sshll.u32 %s2174_s6, 4  ;;  %s2867_s28 = sld [smem:[#allocation34_spill]]  ;;  %s63_s27 = int_to_ptr.vmem [resolvable:$true] %s62_s27 }
  0x1d   :  { %s2175_s3 = smov 128   ;;  %s2176_s0 = smov 8  }
  0x1e   :  { %s2177_s4 = smov [#allocation10]   ;;  %s128_s5 = sshll.u32 %s2846_s14, 4  ;;  %s129_s5 = int_to_ptr.hbm [resolvable:$true] %s128_s5 }
  0x1f   :  { %s88_s30 = sshll.u32 %s2177_s4, 4  ;;  %s152_s6 = sshll.u32 %s2848_s16, 4  ;;  %s89_s30 = int_to_ptr.vmem [resolvable:$true] %s88_s30  ;;  %s153_s6 = int_to_ptr.hbm [resolvable:$true] %s152_s6 }
  0x20   :  { %s2178_s7 = smov [#allocation13]   ;;  %s2868_s4 = sld [smem:[#allocation31_spill]] }
  0x21   :  { %s60_s2 = sshll.u32 %s2866_s26, 4  ;;  %s130_s17 = sshll.u32 %s2178_s7, 4  ;;  %s61_s2 = int_to_ptr.hbm [resolvable:$true] %s60_s2  ;;  %s131_s17 = int_to_ptr.vmem [resolvable:$true] %s130_s17 }
  0x22   :  { %s86_s29 = sshll.u32 %s2867_s28, 4  ;;  %s2180_s1 = smov [#allocation4]   ;;  %s87_s29 = int_to_ptr.hbm [resolvable:$true] %s86_s29 }
  0x23   :  { %68 = dma.hbm_to_vmem [thread:$0]  %s61_s2, 256, %s63_s27, [#allocation8], %s2175_s3, %s2175_s3, %s2176_s0  }
  0x24   :  { %94 = dma.hbm_to_vmem [thread:$0]  %s87_s29, 256, %s89_s30, [#allocation11], %s2175_s3, %s2175_s3, %s2176_s0  }
  0x25   :  { %136 = dma.hbm_to_vmem [thread:$0]  %s129_s5, 512, %s131_s17, [#allocation14], %s2175_s3, %s2175_s3, %s2176_s0  }
  0x26   :  { %s2179_s2 = smov [#allocation16]   ;;  %s47_s24 = sshll.u32 %s2868_s4, 4  ;;  %s48_s24 = int_to_ptr.hbm [resolvable:$true] %s47_s24 }
  0x27   :  { %s154_s14 = sshll.u32 %s2179_s2, 4  ;;  %s2869_s30 = sld [smem:[#allocation33_spill]]  ;;  %s155_s14 = int_to_ptr.vmem [resolvable:$true] %s154_s14 }
  0x28   :  { %160 = dma.hbm_to_vmem [thread:$0]  %s153_s6, 512, %s155_s14, [#allocation17], %s2175_s3, %s2175_s3, %s2176_s0  }
  0x29   :  { %s49_s26 = sshll.u32 %s2180_s1, 4  ;;  %s2181_s5 = smov [#allocation9]   ;;  %s50_s26 = int_to_ptr.vmem [resolvable:$true] %s49_s26 }
  0x2a   :  { %55 = dma.hbm_to_vmem [thread:$0]  %s48_s24, 256, %s50_s26, [#allocation5], %s2175_s3, %s2175_s3, %s2176_s0  }
  0x2b   :  { %s75_s7 = sshll.u32 %s2181_s5, 4  ;;  %s2870_s27 = sld [smem:[#allocation35_spill]]  ;;  %s76_s7 = int_to_ptr.vmem [resolvable:$true] %s75_s7 }
  0x2c   :  { %s142_s4 = sshll.u32 %s2847_s15, 4  ;;  %s2182_s16 = smov [#allocation12]   ;;  %s143_s4 = int_to_ptr.hbm [resolvable:$true] %s142_s4 }
  0x2d   :  { %s73_s25 = sshll.u32 %s2869_s30, 4  ;;  %s101_s29 = sshll.u32 %s2182_s16, 4  ;;  %s74_s25 = int_to_ptr.hbm [resolvable:$true] %s73_s25  ;;  %s102_s29 = int_to_ptr.vmem [resolvable:$true] %s101_s29 }
  0x2e   :  { %81 = dma.hbm_to_vmem [thread:$0]  %s74_s25, 256, %s76_s7, [#allocation8], %s2175_s3, %s2175_s3, %s2176_s0  }
  0x2f   :  { %s2183_s24 = smov [#allocation15]   ;;  %s167_s5 = sshll.u32 %s2850_s18, 4  ;;  %s168_s5 = int_to_ptr.hbm [resolvable:$true] %s167_s5 }
  0x30   :  { %s144_s30 = sshll.u32 %s2183_s24, 4  ;;  %s187_s15 = sshll.u32 %s2854_s22, 4  ;;  %s145_s30 = int_to_ptr.vmem [resolvable:$true] %s144_s30  ;;  %s188_s15 = int_to_ptr.hbm [resolvable:$true] %s187_s15 }
  0x31   :  { %s99_s28 = sshll.u32 %s2870_s27, 4  ;;  %s2184_s17 = smov [#allocation18]   ;;  %s100_s28 = int_to_ptr.hbm [resolvable:$true] %s99_s28 }
  0x32   :  { %107 = dma.hbm_to_vmem [thread:$0]  %s100_s28, 256, %s102_s29, [#allocation11], %s2175_s3, %s2175_s3, %s2176_s0  }
  0x33   :  { %147 = dma.hbm_to_vmem [thread:$0]  %s143_s4, 16, %s145_s30, [#allocation14]  }
  0x34   :  { %s169_s2 = sshll.u32 %s2184_s17, 4  ;;  %s2185_s27 = smov [#allocation19]   ;;  %s170_s2 = int_to_ptr.vmem [resolvable:$true] %s169_s2 }
  0x35   :  { %175 = dma.hbm_to_vmem [thread:$0]  %s168_s5, 512, %s170_s2, [#allocation17], %s2175_s3, %s2175_s3, %s2176_s0  }
  0x36   :  { %s189_s28 = sshll.u32 %s2185_s27, 4  ;;  %s190_s28 = int_to_ptr.vmem [resolvable:$true] %s189_s28 }
  0x37   :  { %192 = dma.hbm_to_vmem [thread:$0]  %s188_s15, 16, %s190_s28, [#allocation20]  }
  0x38   :  { %2159 = dma.done.wait [#allocation5], 256  }
  0x39   :  { %2160 = vsyncadd [#allocation5], 4294967040 }
  0x3a   :  { %2161 = dma.done.wait [#allocation8], 512  }
  0x3b   :  { %2162 = vsyncadd [#allocation8], 4294966784 }
  0x3c   :  { %2163 = dma.done.wait [#allocation11], 512  }
  0x3d   :  { %2164 = vsyncadd [#allocation11], 4294966784 }
  0x3e   :  { %2165 = dma.done.wait [#allocation14], 528  }
  0x3f   :  { %2166 = vsyncadd [#allocation14], 4294966768 }
  0x40   :  { %2167 = dma.done.wait [#allocation17], 1024  }
  0x41   :  { %2168 = vsyncadd [#allocation17], 4294966272 }
  0x42   :  { %2169 = dma.done.wait [#allocation20], 16  }
  0x43   :  { %2170 = vsyncadd [#allocation20], 4294967280  ;;  %v283_v0 = vlaneseq  ;;  %v233_v2 = vld [vmem:[#allocation4] sm:$0xff]  ;;  %v234_v3 = vld [vmem:[#allocation4 + $0x8] sm:$0xff]  ;;  %s2871_s3 = sld [smem:[#allocation36_spill]]  ;;  %vm432_vm0 = vcmask 261120  }
  0x44   :  { %250 = vxpose.xlu0.b32.start.end [1/1] (short) (narrow) %v233_v2, 8  ;;  %731 = vxpose.xlu1.b32.start.end [1/1] (short) (narrow) %v234_v3, 8  ;;  %v235_v4 = vld [vmem:[#allocation7] sm:$0xff]  ;;  %v236_v5 = vld [vmem:[#allocation7 + $0x8] sm:$0xff]  ;;  %v2381_v12 = vld [vmem:[#allocation9] sm:$0xff]  ;;  %s2872_s14 = sld [smem:[#allocation37_spill]] }
  0x45   :  { %v2368_v1 = vshrl.u32 %v283_v0, 7  ;;  %v2383_v13 = vld [vmem:[#allocation10] sm:$0xff]  ;;  %v375_v14 = vperm.slane %v2381_v12, 1  ;;  %v382_v22 = vperm.slane %v2381_v12, 2  ;;  %v410_v32 = vperm.slane %v2381_v12, 6  ;;  %v2416_v43 = vld [vmem:[#allocation9 + $0x8] sm:$0xff] }
  0x46   :  { %v621_v15 = vperm.slane %v2383_v13, 2  ;;  %v607_v19 = vperm.slane %v2383_v13, 0  ;;  %v628_v25 = vperm.slane %v2383_v13, 3  ;;  %v642_v29 = vperm.slane %v2383_v13, 5  ;;  %v2423_v48 = vld [vmem:[#allocation10 + $0x8] sm:$0xff]  ;;  %s1840_s4 = sld [smem:[#allocation3 + $0x81]] }
  0x47   :  { %1865 = vset.pattern.permute.xlu2 %v2368_v1  ;;  %v635_v31 = vperm.slane %v2383_v13, 4  ;;  %v403_v34 = vperm.slane %v2381_v12, 5  ;;  %v656_v44 = vperm.slane %v2383_v13, 7  ;;  %v850_v45 = vperm.slane %v2416_v43, 1  ;;  %s1802_s6 = sshll.u32 %s2855_s23, 4  ;;  %s1803_s6 = int_to_ptr.hbm [resolvable:$true] %s1802_s6 }
  0x48   :  { %v1082_v50 = vperm.slane %v2423_v48, 1  ;;  %v368_v53 = vperm.slane %v2381_v12, 0  ;;  %v843_v54 = vperm.slane %v2416_v43, 0  ;;  %v864_v55 = vperm.slane %v2416_v43, 3 }
  0x49   :  { %v1075_v57 = vperm.slane %v2423_v48, 0  ;;  %v1103_v58 = vperm.slane %v2423_v48, 4  ;;  %v614_v61 = vperm.slane %v2383_v13, 1  ;;  %v1089_v62 = vperm.slane %v2423_v48, 2  ;;  %v2442_v0 = vld [vmem:[%s2871_s3] ss:$0 sm:$0xff] }
  0x4a   :  { %v885_v63 = vperm.slane %v2416_v43, 6  ;;  %vm1206_vm1 = vcmask 1041409   ;;  %vm1208_vm2 = vcmask 1042434   ;;  %vm1210_vm3 = vcmask 1043459  }
  0x4b   :  { %vm1212_vm4 = vcmask 1044484   ;;  %vm1214_vm5 = vcmask 1045509   ;;  %vm727_vm6 = vcmask 64512   ;;  %vm1216_vm7 = vcmask 1046534  }
  0x4c   :  { %489 = vxpose.xlu0.b32.start.end [1/1] (short) (narrow) %v235_v4, 8  ;;  %963 = vxpose.xlu1.b32.start.end [1/1] (short) (narrow) %v236_v5, 8  ;;  %v2452_v5 = vld [vmem:[%s2872_s14] ss:$0 sm:$0xff]  ;;  %vm1218_vm8 = vcmask 1047559   ;;  %s1839_s14 = sld [smem:[#allocation3 + $0x80]] }
  0x4d   :  { %vm1665_vm13 = vcmask 1040384   ;;  %vm1791_vm14 = vcmask 8192   ;;  %vm1794_vm15 = vcmask 9217  }
  0x9f   :  { %1867 = vset.pattern.permute.xlu1 %v2368_v1 }
  0xb3   :  { %1866 = vset.pattern.permute.xlu0 %v2368_v1 }
  0xe8   :  { %v2373_v6 = vpop.trf.xlu0  ;;  %v2388_v17 = vpop.trf.xlu1 }
  0xe9   :  { %v282_v7 = vperm.slane %v2373_v6, 0  ;;  %v289_v9 = vperm.slane %v2373_v6, 1  ;;  %v296_v16 = vperm.slane %v2373_v6, 2  ;;  %v763_v20 = vperm.slane %v2388_v17, 0 }
  0xea   :  { %v303_v24 = vperm.slane %v2373_v6, 3  ;;  %v777_v26 = vperm.slane %v2388_v17, 2  ;;  %v310_v30 = vperm.slane %v2373_v6, 4  ;;  %v317_v36 = vperm.slane %v2373_v6, 5 }
  0xeb   :  { %287 = vperm.xlu2 %1865, %v282_v7   ;;  %v798_v38 = vperm.slane %v2388_v17, 5  ;;  %v791_v40 = vperm.slane %v2388_v17, 4  ;;  %v324_v42 = vperm.slane %v2373_v6, 6  ;;  %v805_v49 = vperm.slane %v2388_v17, 6 }
  0xec   :  { %v331_v51 = vperm.slane %v2373_v6, 7  ;;  %v389_v7 = vperm.slane %v2381_v12, 3 }
  0xf0   :  { %v2376_v8 = vpop.trf.xlu0  ;;  %v2393_v21 = vpop.trf.xlu1 }
  0xf1   :  { %v528_v10 = vperm.slane %v2376_v8, 1  ;;  %v521_v11 = vperm.slane %v2376_v8, 0  ;;  %v535_v18 = vperm.slane %v2376_v8, 2  ;;  %v1002_v23 = vperm.slane %v2393_v21, 1 }
  0xf2   :  { %v542_v27 = vperm.slane %v2376_v8, 3  ;;  %v995_v28 = vperm.slane %v2393_v21, 0  ;;  %v549_v33 = vperm.slane %v2376_v8, 4  ;;  %v1023_v35 = vperm.slane %v2393_v21, 4 }
  0xf3   :  { %294 = vperm.xlu2 %1865, %v289_v9   ;;  %533 = vperm.xlu1 %1867, %v528_v10   ;;  %v1016_v37 = vperm.slane %v2393_v21, 3  ;;  %v556_v39 = vperm.slane %v2376_v8, 5  ;;  %v1037_v41 = vperm.slane %v2393_v21, 6  ;;  %v563_v46 = vperm.slane %v2376_v8, 6 }
  0xf4   :  { %526 = vperm.xlu0 %1866, %v521_v11   ;;  %v570_v59 = vperm.slane %v2376_v8, 7  ;;  %v871_v8 = vperm.slane %v2416_v43, 4  ;;  %v1124_v10 = vperm.slane %v2423_v48, 7 }
  0xfb   :  { %301 = vperm.xlu2 %1865, %v296_v16   ;;  %380 = vperm.xlu1 %1867, %v375_v14  }
  0xfc   :  { %626 = vperm.xlu0 %1866, %v621_v15  }
 0x103   :  { %540 = vperm.xlu2 %1865, %v535_v18   ;;  %612 = vperm.xlu1 %1867, %v607_v19   ;;  %v770_v19 = vperm.slane %v2388_v17, 1 }
 0x104   :  { %768 = vperm.xlu0 %1866, %v763_v20   ;;  %v1110_v20 = vperm.slane %v2423_v48, 5 }
 0x10b   :  { %308 = vperm.xlu2 %1865, %v303_v24   ;;  %387 = vperm.xlu1 %1867, %v382_v22  }
 0x10c   :  { %1007 = vperm.xlu0 %1866, %v1002_v23  }
 0x113   :  { %547 = vperm.xlu2 %1865, %v542_v27   ;;  %633 = vperm.xlu1 %1867, %v628_v25   ;;  %v396_v25 = vperm.slane %v2381_v12, 4 }
 0x114   :  { %782 = vperm.xlu0 %1866, %v777_v26   ;;  %v892_v26 = vperm.slane %v2416_v43, 7 }
 0x11b   :  { %315 = vperm.xlu2 %1865, %v310_v30   ;;  %1000 = vperm.xlu1 %1867, %v995_v28   ;;  %v1009_v30 = vperm.slane %v2393_v21, 2 }
 0x11c   :  { %647 = vperm.xlu0 %1866, %v642_v29  }
 0x123   :  { %554 = vperm.xlu2 %1865, %v549_v33   ;;  %640 = vperm.xlu1 %1867, %v635_v31  }
 0x124   :  { %415 = vperm.xlu0 %1866, %v410_v32  }
 0x12b   :  { %322 = vperm.xlu2 %1865, %v317_v36   ;;  %408 = vperm.xlu1 %1867, %v403_v34   ;;  %v784_v34 = vperm.slane %v2388_v17, 3 }
 0x12c   :  { %1028 = vperm.xlu0 %1866, %v1023_v35  }
 0x133   :  { %561 = vperm.xlu2 %1865, %v556_v39   ;;  %1021 = vperm.xlu1 %1867, %v1016_v37  }
 0x134   :  { %803 = vperm.xlu0 %1866, %v798_v38   ;;  %v649_v38 = vperm.slane %v2383_v13, 6 }
 0x13b   :  { %329 = vperm.xlu2 %1865, %v324_v42   ;;  %796 = vperm.xlu1 %1867, %v791_v40  }
 0x13c   :  { %1042 = vperm.xlu0 %1866, %v1037_v41  }
 0x143   :  { %568 = vperm.xlu2 %1865, %v563_v46   ;;  %661 = vperm.xlu1 %1867, %v656_v44   ;;  %v417_v44 = vperm.slane %v2381_v12, 7 }
 0x144   :  { %855 = vperm.xlu0 %1866, %v850_v45  }
 0x145   :  { %v2421_v47 = vpop.permute.xlu2 %287 }
 0x14b   :  { %336 = vperm.xlu2 %1865, %v331_v51   ;;  %810 = vperm.xlu1 %1867, %v805_v49   ;;  %v2499_v51 = vld [vmem:[%s2844_s12] ss:$0 sm:$0xff] }
 0x14c   :  { %1087 = vperm.xlu0 %1866, %v1082_v50  }
 0x14d   :  { %v295_v52 = vpop.permute.xlu2 %294 }
 0x14e   :  { %v342_v2 = vmul.f32 %v2442_v0, %v295_v52 }
 0x150   :  { %v353_v9 = vadd.f32 %v2452_v5, %v342_v2 }
 0x152   :  { %v361_v11 = vmax.f32 %v353_v9, 0.0 }
 0x153   :  { %373 = vperm.xlu2 %1865, %v368_v53   ;;  %848 = vperm.xlu1 %1867, %v843_v54   ;;  %v1030_v54 = vperm.slane %v2393_v21, 5 }
 0x154   :  { %869 = vperm.xlu0 %1866, %v864_v55  }
 0x155   :  { %v302_v56 = vpop.permute.xlu2 %301 }
 0x156   :  { %v343_v42 = vmul.f32 %v2442_v0, %v302_v56  ;;  %v2507_v56 = vld [vmem:[%s2845_s13] ss:$0 sm:$0xff] }
 0x158   :  { %v354_v45 = vadd.f32 %v2452_v5, %v343_v42 }
 0x15a   :  { %v362_v52 = vmax.f32 %v354_v45, 0.0 }
 0x15b   :  { %575 = vperm.xlu2 %1865, %v570_v59   ;;  %1080 = vperm.xlu1 %1867, %v1075_v57   ;;  %v341_v59 = vmul.f32 %v2442_v0, %v2421_v47 }
 0x15c   :  { %1108 = vperm.xlu0 %1866, %v1103_v58  }
 0x15d   :  { %v2434_v60 = vpop.permute.xlu2 %540 }
 0x15e   :  { %v582_v57 = vmul.f32 %v2499_v51, %v2434_v60 }
 0x160   :  { %v593_v60 = vadd.f32 %v2507_v56, %v582_v57 }
 0x163   :  { %619 = vperm.xlu2 %1865, %v614_v61   ;;  %1094 = vperm.xlu1 %1867, %v1089_v62  }
 0x164   :  { %890 = vperm.xlu0 %1866, %v885_v63  }
 0x165   :  { %v2445_v3 = vpop.permute.xlu2 %308  ;;  %v2447_v4 = vpop.permute.xlu1 %533 }
 0x166   :  { %v527_v6 = vpop.permute.xlu0 %526 }
 0x167   :  { %v580_v12 = vmul.f32 %v2499_v51, %v527_v6 }
 0x16b   :  { %394 = vperm.xlu2 %1865, %v389_v7   ;;  %876 = vperm.xlu1 %1867, %v871_v8   ;;  %v591_v7 = vadd.f32 %v2507_v56, %v580_v12 }
 0x16c   :  { %1129 = vperm.xlu0 %1866, %v1124_v10   ;;  %v352_v10 = vadd.f32 %v2452_v5, %v341_v59 }
 0x16d   :  { %v548_v14 = vpop.permute.xlu2 %547  ;;  %v381_v15 = vpop.permute.xlu1 %380 }
 0x16e   :  { %v425_v16 = vmul.f32 %v381_v15, %v361_v11  ;;  %v2458_v18 = vpop.permute.xlu0 %626  ;;  %v583_v61 = vmul.f32 %v2499_v51, %v548_v14 }
 0x170   :  { %v440_v55 = vsel %vm432_vm0, %v425_v16, 0.0  ;;  %v594_v11 = vadd.f32 %v2507_v56, %v583_v61  ;;  %v812_v16 = vperm.slane %v2388_v17, 7 }
 0x171   :  { %v441_v62 = vrot.slane %v440_v55, 4 }
 0x173   :  { %775 = vperm.xlu2 %1865, %v770_v19   ;;  %1115 = vperm.xlu1 %1867, %v1110_v20   ;;  %v442_v14 = vadd.f32 %v441_v62, %v440_v55  ;;  %v599_v19 = vmax.f32 %v591_v7, 0.0  ;;  %v601_v20 = vmax.f32 %v593_v60, 0.0 }
 0x175   :  { %v2462_v22 = vpop.permute.xlu2 %315  ;;  %v2464_v23 = vpop.permute.xlu1 %612 }
 0x176   :  { %v2466_v24 = vpop.permute.xlu0 %768  ;;  %v663_v17 = vmul.f32 %v2464_v23, %v599_v19 }
 0x17b   :  { %401 = vperm.xlu2 %1865, %v396_v25   ;;  %897 = vperm.xlu1 %1867, %v892_v26  }
 0x17d   :  { %v555_v27 = vpop.permute.xlu2 %554  ;;  %v388_v28 = vpop.permute.xlu1 %387 }
 0x17e   :  { %v2470_v29 = vpop.permute.xlu0 %1007  ;;  %v426_v53 = vmul.f32 %v388_v28, %v362_v52  ;;  %v584_v15 = vmul.f32 %v2499_v51, %v555_v27  ;;  %v360_v28 = vmax.f32 %v352_v10, 0.0  ;;  %v581_v27 = vmul.f32 %v2499_v51, %v2447_v4 }
 0x17f   :  { %v671_v4 = vsel %vm432_vm0, %v663_v17, 0.0  ;;  %v1052_v23 = vmul.f32 %v2499_v51, %v2470_v29  ;;  %v344_v29 = vmul.f32 %v2442_v0, %v2445_v3 }
 0x180   :  { %v447_v63 = vsel %vm432_vm0, %v426_v53, 0.0  ;;  %v592_v62 = vadd.f32 %v2507_v56, %v581_v27  ;;  %v672_v10 = vrot.slane %v671_v4, 4 }
 0x181   :  { %v448_v47 = vrot.slane %v447_v63, 4 }
 0x183   :  { %1014 = vperm.xlu2 %1865, %v1009_v30   ;;  %v449_v26 = vadd.f32 %v448_v47, %v447_v63  ;;  %v443_v30 = vrot.slane %v442_v14, 2 }
 0x185   :  { %v2473_v31 = vpop.permute.xlu2 %322  ;;  %v634_v32 = vpop.permute.xlu1 %633  ;;  %v450_v12 = vrot.slane %v449_v26, 2  ;;  %v444_v57 = vadd.f32 %v443_v30, %v442_v14 }
 0x186   :  { %v2475_v33 = vpop.permute.xlu0 %782  ;;  %v346_v27 = vmul.f32 %v2442_v0, %v2473_v31 }
 0x187   :  { %v451_v60 = vadd.f32 %v450_v12, %v449_v26  ;;  %v248_v12 = vld [vmem:[%s2842_s10 + $0x18] sm:$0xff] }
 0x18b   :  { %789 = vperm.xlu2 %1865, %v784_v34   ;;  %v665_v34 = vmul.f32 %v2458_v18, %v601_v20  ;;  %v1044_v18 = vperm.slane %v2393_v21, 7  ;;  %v600_v20 = vmax.f32 %v592_v62, 0.0  ;;  %v357_v62 = vadd.f32 %v2452_v5, %v346_v27 }
 0x18d   :  { %v562_v35 = vpop.permute.xlu2 %561  ;;  %v2478_v36 = vpop.permute.xlu1 %1000 }
 0x18e   :  { %v648_v37 = vpop.permute.xlu0 %647  ;;  %v585_v58 = vmul.f32 %v2499_v51, %v562_v35  ;;  %v595_v35 = vadd.f32 %v2507_v56, %v584_v15 }
 0x190   :  { %v596_v9 = vadd.f32 %v2507_v56, %v585_v58  ;;  %v685_v58 = vsel %vm432_vm0, %v665_v34, 0.0  ;;  %v603_v59 = vmax.f32 %v595_v35, 0.0  ;;  %v819_v34 = vmul.f32 %v2442_v0, %v2466_v24 }
 0x191   :  { %v686_v21 = vrot.slane %v685_v58, 4  ;;  %v452_v35 = vrot.slane %v451_v60, 1 }
 0x192   :  { %v604_v25 = vmax.f32 %v596_v9, 0.0  ;;  %v445_v9 = vrot.slane %v444_v57, 1 }
 0x193   :  { %654 = vperm.xlu2 %1865, %v649_v38   ;;  %v602_v38 = vmax.f32 %v594_v11, 0.0  ;;  %v687_v30 = vadd.f32 %v686_v21, %v685_v58  ;;  %v453_v58 = vadd.f32 %v452_v35, %v451_v60 }
 0x195   :  { %v2481_v39 = vpop.permute.xlu2 %329  ;;  %v2483_v40 = vpop.permute.xlu1 %640  ;;  %v666_v53 = vmul.f32 %v634_v32, %v602_v38  ;;  %v446_v38 = vadd.f32 %v445_v9, %v444_v57  ;;  %v827_v57 = vadd.f32 %v2452_v5, %v819_v34  ;;  %v245_v34 = vld [vmem:[%s2842_s10] sm:$0xff] }
 0x196   :  { %v2485_v41 = vpop.permute.xlu0 %415  ;;  %v667_v63 = vmul.f32 %v2483_v40, %v603_v59  ;;  %v1060_v40 = vadd.f32 %v2507_v56, %v1052_v23  ;;  %v347_v3 = vmul.f32 %v2442_v0, %v2481_v39  ;;  %v688_v39 = vrot.slane %v687_v30, 2  ;;  %v247_v59 = vld [vmem:[%s2842_s10 + $0x10] sm:$0xff] }
 0x197   :  { %v692_v32 = vsel %vm432_vm0, %v666_v53, 0.0  ;;  %v2599_v27 = vmul.f32 0.041666668, %v245_v34 }
 0x198   :  { %v693_v15 = vrot.slane %v692_v32, 4  ;;  %v1068_v24 = vmax.f32 %v1060_v40, 0.0  ;;  %v358_v31 = vadd.f32 %v2452_v5, %v347_v3 }
 0x19b   :  { %422 = vperm.xlu2 %1865, %v417_v44  }
 0x19d   :  { %v2490_v46 = vpop.permute.xlu2 %568  ;;  %v2492_v49 = vpop.permute.xlu1 %408 }
 0x19e   :  { %v2494_v50 = vpop.permute.xlu0 %1028 }
 0x1a3   :  { %1035 = vperm.xlu2 %1865, %v1030_v54   ;;  %v668_v54 = vmul.f32 %v648_v37, %v604_v25  ;;  %v699_v25 = vsel %vm432_vm0, %v667_v63, 0.0 }
 0x1a5   :  { %v2516_v2 = vpop.permute.xlu2 %336  ;;  %v2518_v6 = vpop.permute.xlu1 %1021  ;;  %v706_v37 = vsel %vm432_vm0, %v668_v54, 0.0  ;;  %v700_v54 = vrot.slane %v699_v25, 4 }
 0x1a6   :  { %v2521_v8 = vpop.permute.xlu0 %803 }
 0x1ab   :  { %817 = vperm.xlu2 %1865, %v812_v16   ;;  %v707_v16 = vrot.slane %v706_v37, 4 }
 0x1ad   :  { %v374_v42 = vpop.permute.xlu2 %373  ;;  %v2531_v44 = vpop.permute.xlu1 %796  ;;  %v708_v53 = vadd.f32 %v707_v16, %v706_v37  ;;  %v2580_v37 = vmul.f32 0.041666668, %v247_v59  ;;  %v1096_v16 = vperm.slane %v2423_v48, 3 }
 0x1ae   :  { %v424_v45 = vmul.f32 %v374_v42, %v360_v28  ;;  %v2536_v52 = vpop.permute.xlu0 %1042  ;;  %v857_v28 = vperm.slane %v2416_v43, 2  ;;  %v673_v42 = vadd.f32 %v672_v10, %v671_v4  ;;  %v246_v10 = vld [vmem:[%s2842_s10 + $0x8] sm:$0xff] }
 0x1af   :  { %v2590_v40 = vmul.f32 0.041666668, %v246_v10  ;;  %v878_v10 = vperm.slane %v2416_v43, 5 }
 0x1b0   :  { %v433_v55 = vsel %vm432_vm0, %v424_v45, 0.0  ;;  %v694_v45 = vadd.f32 %v693_v15, %v692_v32 }
 0x1b1   :  { %v434_v61 = vrot.slane %v433_v55, 4 }
 0x1b2   :  { %v695_v63 = vrot.slane %v694_v45, 2 }
 0x1b3   :  { %v435_v7 = vadd.f32 %v434_v61, %v433_v55  ;;  %1049 = vperm.xlu2 %1865, %v1044_v18   ;;  %v2568_v18 = vmul.f32 0.041666668, %v248_v12  ;;  %v674_v61 = vrot.slane %v673_v42, 2  ;;  %v835_v12 = vmax.f32 %v827_v57, 0.0 }
 0x1b5   :  { %v436_v47 = vrot.slane %v435_v7, 2  ;;  %v2548_v11 = vpop.permute.xlu2 %575  ;;  %v2550_v14 = vpop.permute.xlu1 %661  ;;  %1394 = vmatpush.msra.mxu2 %v2568_v18  ;;  %v675_v35 = vadd.f32 %v674_v61, %v673_v42  ;;  %v1374_v42 = vld [vmem:[#allocation12] sm:$0xff] }
 0x1b6   :  { %v2554_v19 = vpop.permute.xlu0 %855 }
 0x1b7   :  { %v437_v26 = vadd.f32 %v436_v47, %v435_v7  ;;  %v701_v7 = vadd.f32 %v700_v54, %v699_v25  ;;  %v709_v47 = vrot.slane %v708_v53, 2  ;;  %1395 = vmatpush.msra.mxu2 %v2580_v37  ;;  %v689_v25 = vadd.f32 %v688_v39, %v687_v30 }
 0x1b8   :  { %v1051_v39 = vmul.f32 %v2499_v51, %v2478_v36  ;;  %v676_v57 = vrot.slane %v675_v35, 1 }
 0x1b9   :  { %v438_v17 = vrot.slane %v437_v26, 1  ;;  %1396 = vmatpush.msra.mxu2 %v2590_v40  ;;  %v702_v54 = vrot.slane %v701_v7, 2  ;;  %v710_v30 = vadd.f32 %v709_v47, %v708_v53 }
 0x1ba   :  { %v677_v34 = vadd.f32 %v676_v57, %v675_v35 }
 0x1bb   :  { %v439_v55 = vadd.f32 %v438_v17, %v437_v26  ;;  %862 = vperm.xlu2 %1865, %v857_v28   ;;  %v355_v26 = vadd.f32 %v2452_v5, %v344_v29  ;;  %v696_v17 = vadd.f32 %v695_v63, %v694_v45  ;;  %v345_v29 = vmul.f32 %v2442_v0, %v2462_v22 }
 0x1bc   :  { %1397 = vmatpush.msra.mxu2 %v2599_v27  ;;  %v690_v45 = vrot.slane %v689_v25, 1 }
 0x1bd   :  { %v1207_v4 = vsel %vm1206_vm1, %v446_v38, %v439_v55  ;;  %v620_v23 = vpop.permute.xlu2 %619  ;;  %v2577_v32 = vpop.permute.xlu1 %810  ;;  %v365_v55 = vmax.f32 %v357_v62, 0.0  ;;  %v363_v59 = vmax.f32 %v355_v26, 0.0  ;;  %1824 = vmatmul.msk.f32.vlgmr.msra.gmra.mxu2 %vm432_vm0, %v1374_v42  ;;  %v2611_v36 = vadd.f32 %v2452_v5, %v345_v29 }
 0x1be   :  { %v664_v21 = vmul.f32 %v620_v23, %v600_v20  ;;  %v1088_v60 = vpop.permute.xlu0 %1087  ;;  %v2583_v9 = vsel %vm1208_vm2, %v453_v58, %v1207_v4  ;;  %v366_v20 = vmax.f32 %v358_v31, 0.0  ;;  %1546 = vmatpush.msrb.mxu2 %v2568_v18  ;;  %v697_v4 = vrot.slane %v696_v17, 1 }
 0x1bf   :  { %v1132_v15 = vmul.f32 %v1088_v60, %v1068_v24  ;;  %v429_v22 = vmul.f32 %v2492_v49, %v365_v55  ;;  %v703_v23 = vadd.f32 %v702_v54, %v701_v7  ;;  %v1059_v49 = vadd.f32 %v2507_v56, %v1051_v39 }
 0x1c0   :  { %v678_v28 = vsel %vm432_vm0, %v664_v21, 0.0  ;;  %v430_v58 = vmul.f32 %v2485_v41, %v366_v20  ;;  %v711_v41 = vrot.slane %v710_v30, 1  ;;  %1547 = vmatpush.msrb.mxu2 %v2580_v37  ;;  %v691_v26 = vadd.f32 %v690_v45, %v689_v25 }
 0x1c1   :  { %v679_v3 = vrot.slane %v678_v28, 4  ;;  %v1146_v38 = vsel %vm432_vm0, %v1132_v15, 0.0  ;;  %v468_v7 = vsel %vm432_vm0, %v429_v22, 0.0  ;;  %v704_v54 = vrot.slane %v703_v23, 1 }
 0x1c2   :  { %v1147_v31 = vrot.slane %v1146_v38, 4  ;;  %v475_v47 = vsel %vm432_vm0, %v430_v58, 0.0  ;;  %1548 = vmatpush.msrb.mxu2 %v2590_v40  ;;  %v469_v25 = vrot.slane %v468_v7, 4  ;;  %v1067_v39 = vmax.f32 %v1059_v49, 0.0 }
 0x1c3   :  { %v680_v24 = vadd.f32 %v679_v3, %v678_v28  ;;  %1101 = vperm.xlu2 %1865, %v1096_v16   ;;  %v698_v3 = vadd.f32 %v697_v4, %v696_v17  ;;  %v476_v29 = vrot.slane %v475_v47, 4 }
 0x1c4   :  { %v1148_v15 = vadd.f32 %v1147_v31, %v1146_v38  ;;  %v1375_v38 = vld [vmem:[#allocation12 + $0x8] sm:$0xff]  ;;  %1549 = vmatpush.msrb.mxu2 %v2599_v27 }
 0x1c5   :  { %v681_v53 = vrot.slane %v680_v24, 2  ;;  %v395_v61 = vpop.permute.xlu2 %394  ;;  %v849_v62 = vpop.permute.xlu1 %848  ;;  %1825 = vmatmul.msk.f32.gmra.mxu2 %vm432_vm0, %v1375_v38 }
 0x1c6   :  { %v427_v63 = vmul.f32 %v395_v61, %v363_v59  ;;  %v899_v21 = vmul.f32 %v849_v62, %v835_v12  ;;  %v712_v12 = vadd.f32 %v711_v41, %v710_v30  ;;  %v1149_v42 = vrot.slane %v1148_v15, 2 }
 0x1c7   :  { %v682_v60 = vadd.f32 %v681_v53, %v680_v24  ;;  %v705_v30 = vadd.f32 %v704_v54, %v703_v23  ;;  %v1117_v61 = vperm.slane %v2423_v48, 6 }
 0x1c8   :  { %v454_v16 = vsel %vm432_vm0, %v427_v63, 0.0  ;;  %v907_v43 = vsel %vm432_vm0, %v899_v21, 0.0  ;;  %v1150_v4 = vadd.f32 %v1149_v42, %v1148_v15  ;;  %v470_v15 = vadd.f32 %v469_v25, %v468_v7 }
 0x1c9   :  { %v683_v20 = vrot.slane %v682_v60, 1  ;;  %v455_v28 = vrot.slane %v454_v16, 4  ;;  %v908_v58 = vrot.slane %v907_v43, 4 }
 0x1ca   :  { %v1151_v54 = vrot.slane %v1150_v4, 1  ;;  %v471_v7 = vrot.slane %v470_v15, 2 }
 0x1cb   :  { %v684_v55 = vadd.f32 %v683_v20, %v682_v60  ;;  %v456_v24 = vadd.f32 %v455_v28, %v454_v16  ;;  %883 = vperm.xlu2 %1865, %v878_v10   ;;  %v909_v23 = vadd.f32 %v908_v58, %v907_v43 }
 0x1cd   :  { %v1247_v35 = vsel %vm1206_vm1, %v684_v55, %v677_v34  ;;  %v457_v17 = vrot.slane %v456_v24, 2  ;;  %v776_v31 = vpop.permute.xlu2 %775  ;;  %v1081_v59 = vpop.permute.xlu1 %1080  ;;  %v364_v34 = vmax.f32 %v2611_v36, 0.0 }
 0x1ce   :  { %v1248_v45 = vsel %vm1208_vm2, %v691_v26, %v1247_v35  ;;  %v820_v57 = vmul.f32 %v2442_v0, %v776_v31  ;;  %v1131_v22 = vmul.f32 %v1081_v59, %v1067_v39  ;;  %v477_v26 = vadd.f32 %v476_v29, %v475_v47 }
 0x1cf   :  { %v458_v53 = vadd.f32 %v457_v17, %v456_v24  ;;  %v1249_v62 = vsel %vm1210_vm3, %v698_v3, %v1248_v45  ;;  %v587_v3 = vmul.f32 %v2499_v51, %v2548_v11  ;;  %v910_v24 = vrot.slane %v909_v23, 2  ;;  %v1315_v45 = vld [vmem:[#allocation13 + $0x18] sm:$0xff] }
 0x1d0   :  { %v828_v63 = vadd.f32 %v2452_v5, %v820_v57  ;;  %v1139_v21 = vsel %vm432_vm0, %v1131_v22, 0.0  ;;  %v1250_v41 = vsel %vm1212_vm4, %v705_v30, %v1249_v62  ;;  %v478_v42 = vrot.slane %v477_v26, 2  ;;  %1338 = vmatpush.msra.mxu1 %v1315_v45 }
 0x1d1   :  { %v459_v60 = vrot.slane %v458_v53, 1  ;;  %v1140_v10 = vrot.slane %v1139_v21, 4  ;;  %v2632_v16 = vsel %vm1214_vm5, %v712_v12, %v1250_v41  ;;  %v598_v25 = vadd.f32 %v2507_v56, %v587_v3  ;;  %v1314_v41 = vld [vmem:[#allocation13 + $0x10] sm:$0xff] }
 0x1d2   :  { %v836_v49 = vmax.f32 %v828_v63, 0.0  ;;  %v1152_v11 = vadd.f32 %v1151_v54, %v1150_v4  ;;  %v479_v57 = vadd.f32 %v478_v42, %v477_v26  ;;  %v472_v22 = vadd.f32 %v471_v7, %v470_v15  ;;  %1339 = vmatpush.msra.mxu1 %v1314_v41 }
 0x1d3   :  { %v460_v20 = vadd.f32 %v459_v60, %v458_v53  ;;  %v1141_v28 = vadd.f32 %v1140_v10, %v1139_v21  ;;  %1122 = vperm.xlu2 %1865, %v1117_v61   ;;  %v606_v53 = vmax.f32 %v598_v25, 0.0 }
 0x1d4   :  { %v900_v55 = vmul.f32 %v2554_v19, %v836_v49  ;;  %v911_v19 = vadd.f32 %v910_v24, %v909_v23  ;;  %v1313_v49 = vld [vmem:[#allocation13 + $0x8] sm:$0xff] }
 0x1d5   :  { %v2640_v43 = vsel %vm1210_vm3, %v460_v20, %v2583_v9  ;;  %v1142_v12 = vrot.slane %v1141_v28, 2  ;;  %v402_v38 = vpop.permute.xlu2 %401  ;;  %v480_v20 = vrot.slane %v479_v57, 1  ;;  %1340 = vmatpush.msra.mxu1 %v1313_v49 }
 0x1d6   :  { %v914_v47 = vsel %vm432_vm0, %v900_v55, 0.0  ;;  %v428_v29 = vmul.f32 %v402_v38, %v364_v34  ;;  %v912_v61 = vrot.slane %v911_v19, 1  ;;  %v670_v34 = vmul.f32 %v2550_v14, %v606_v53  ;;  %v1312_v55 = vld [vmem:[#allocation13] sm:$0xff] }
 0x1d7   :  { %v915_v39 = vrot.slane %v914_v47, 4  ;;  %v1143_v36 = vadd.f32 %v1142_v12, %v1141_v28  ;;  %v473_v28 = vrot.slane %v472_v22, 1  ;;  %1341 = vmatpush.msra.mxu1 %v1312_v55  ;;  %v1278_v12 = vld [vmem:[%s2840_s8 + $0x18] sm:$0xff]  ;;  %v586_v38 = vmul.f32 %v2499_v51, %v2490_v46 }
 0x1d8   :  { %v461_v35 = vsel %vm432_vm0, %v428_v29, 0.0  ;;  %v913_v15 = vadd.f32 %v912_v61, %v911_v19  ;;  %v1095_v29 = vpop.permute.xlu1 %1094  ;;  %1301 = vmatpush.msra.mxu0 %v1278_v12  ;;  %v481_v7 = vadd.f32 %v480_v20, %v479_v57  ;;  %v720_v25 = vsel %vm432_vm0, %v670_v34, 0.0 }
 0x1d9   :  { %v916_v17 = vadd.f32 %v915_v39, %v914_v47  ;;  %v1144_v58 = vrot.slane %v1143_v36, 1  ;;  %v462_v9 = vrot.slane %v461_v35, 4  ;;  %v474_v14 = vadd.f32 %v473_v28, %v472_v22 }
 0x1da   :  { %v1195_v46 = vsel %vm727_vm6, %v2423_v48, 0.0  ;;  %v1275_v48 = vld [vmem:[%s2840_s8] sm:$0xff]  ;;  %v348_v57 = vmul.f32 %v2442_v0, %v2516_v2 }
 0x1db   :  { %v917_v31 = vrot.slane %v916_v17, 2  ;;  %v1145_v59 = vadd.f32 %v1144_v58, %v1143_v36  ;;  %v463_v30 = vadd.f32 %v462_v9, %v461_v35  ;;  %v1277_v36 = vld [vmem:[%s2840_s8 + $0x10] sm:$0xff]  ;;  %1196 = vadd.xlane.f32.xlu1 %v1195_v46 }
 0x1dc   :  { %1302 = vmatpush.msra.mxu0 %v1277_v36  ;;  %v359_v41 = vadd.f32 %v2452_v5, %v348_v57 }
 0x1dd   :  { %v918_v62 = vadd.f32 %v917_v31, %v916_v17  ;;  %v2646_v63 = vsel %vm1206_vm1, %v1152_v11, %v1145_v59  ;;  %v464_v4 = vrot.slane %v463_v30, 2  ;;  %v1015_v21 = vpop.permute.xlu2 %1014  ;;  %v1276_v17 = vld [vmem:[%s2840_s8 + $0x8] sm:$0xff]  ;;  %v597_v59 = vadd.f32 %v2507_v56, %v586_v38  ;;  %s2873_s8 = sld [smem:[#allocation38_spill]] }
 0x1de   :  { %v1053_v60 = vmul.f32 %v2499_v51, %v1015_v21  ;;  %1303 = vmatpush.msra.mxu0 %v1276_v17  ;;  %v367_v2 = vmax.f32 %v359_v41, 0.0  ;;  %v870_v17 = vpop.permute.xlu0 %869 }
 0x1df   :  { %v919_v23 = vrot.slane %v918_v62, 1  ;;  %v465_v10 = vadd.f32 %v464_v4, %v463_v30  ;;  %v721_v30 = vrot.slane %v720_v25, 4  ;;  %v605_v53 = vmax.f32 %v597_v59, 0.0 }
 0x1e0   :  { %v1061_v26 = vadd.f32 %v2507_v56, %v1053_v60  ;;  %1304 = vmatpush.msra.mxu0 %v1275_v48 }
 0x1e1   :  { %v920_v3 = vadd.f32 %v919_v23, %v918_v62  ;;  %v466_v54 = vrot.slane %v465_v10, 1  ;;  %v722_v22 = vadd.f32 %v721_v30, %v720_v25 }
 0x1e2   :  { %v1069_v24 = vmax.f32 %v1061_v26, 0.0 }
 0x1e3   :  { %v467_v47 = vadd.f32 %v466_v54, %v465_v10  ;;  %v2657_v42 = vsel %vm1206_vm1, %v920_v3, %v913_v15  ;;  %v723_v60 = vrot.slane %v722_v22, 2 }
 0x1e4   :  { %v1133_v39 = vmul.f32 %v1095_v29, %v1069_v24 }
 0x1e5   :  { %v2663_v11 = vpop.permute.xlu2 %789  ;;  %v1213_v35 = vsel %vm1212_vm4, %v467_v47, %v2640_v43  ;;  %v724_v26 = vadd.f32 %v723_v60, %v722_v22  ;;  %v728_v47 = vsel %vm727_vm6, %v2383_v13, 0.0  ;;  %v1055_v13 = vmul.f32 %v2499_v51, %v2494_v50 }
 0x1e6   :  { %v1153_v19 = vsel %vm432_vm0, %v1133_v39, 0.0  ;;  %v1215_v58 = vsel %vm1214_vm5, %v474_v14, %v1213_v35  ;;  %v821_v22 = vmul.f32 %v2442_v0, %v2475_v33  ;;  %v1109_v50 = vpop.permute.xlu0 %1108 }
 0x1e7   :  { %v1154_v9 = vrot.slane %v1153_v19, 4  ;;  %v1217_v31 = vsel %vm1216_vm7, %v481_v7, %v1215_v58  ;;  %v725_v55 = vrot.slane %v724_v26, 1 }
 0x1e8   :  { %v829_v60 = vadd.f32 %v2452_v5, %v821_v22 }
 0x1e9   :  { %v1155_v43 = vadd.f32 %v1154_v9, %v1153_v19  ;;  %v726_v39 = vadd.f32 %v725_v55, %v724_v26  ;;  %v877_v9 = vpop.permute.xlu1 %876 }
 0x1eb   :  { %v1156_v45 = vrot.slane %v1155_v43, 2 }
 0x1ed   :  { %v1157_v61 = vadd.f32 %v1156_v45, %v1155_v43  ;;  %v655_v62 = vpop.permute.xlu2 %654  ;;  %v1063_v45 = vadd.f32 %v2507_v56, %v1055_v13 }
 0x1ee   :  { %v669_v4 = vmul.f32 %v655_v62, %v605_v53 }
 0x1ef   :  { %v1158_v21 = vrot.slane %v1157_v61, 1 }
 0x1f0   :  { %v713_v23 = vsel %vm432_vm0, %v669_v4, 0.0 }
 0x1f1   :  { %v1159_v10 = vadd.f32 %v1158_v21, %v1157_v61  ;;  %v714_v49 = vrot.slane %v713_v23, 4  ;;  %v823_v61 = vmul.f32 %v2442_v0, %v2531_v44  ;;  %v825_v21 = vmul.f32 %v2442_v0, %v2577_v32  ;;  %v1116_v41 = vpop.permute.xlu1 %1115 }
 0x1f2   :  { %v1054_v44 = vmul.f32 %v2499_v51, %v2518_v6 }
 0x1f3   :  { %v715_v20 = vadd.f32 %v714_v49, %v713_v23  ;;  %v2685_v28 = vsel %vm1208_vm2, %v1159_v10, %v2646_v63  ;;  %v831_v33 = vadd.f32 %v2452_v5, %v823_v61  ;;  %v833_v26 = vadd.f32 %v2452_v5, %v825_v21 }
 0x1f5   :  { %v716_v34 = vrot.slane %v715_v20, 2  ;;  %v423_v15 = vpop.permute.xlu2 %422  ;;  %v839_v32 = vmax.f32 %v831_v33, 0.0 }
 0x1f6   :  { %v431_v3 = vmul.f32 %v423_v15, %v367_v2 }
 0x1f7   :  { %v717_v54 = vadd.f32 %v716_v34, %v715_v20  ;;  %v837_v34 = vmax.f32 %v829_v60, 0.0 }
 0x1f8   :  { %v482_v24 = vsel %vm432_vm0, %v431_v3, 0.0 }
 0x1f9   :  { %v718_v12 = vrot.slane %v717_v54, 1  ;;  %v483_v38 = vrot.slane %v482_v24, 4 }
 0x1fb   :  { %v719_v29 = vadd.f32 %v718_v12, %v717_v54  ;;  %v484_v14 = vadd.f32 %v483_v38, %v482_v24  ;;  %v891_v24 = vpop.permute.xlu0 %890 }
 0x1fc   :  { %729 = vadd.xlane.f32.xlu2 %v728_v47  ;;  %v1062_v47 = vadd.f32 %v2507_v56, %v1054_v44 }
 0x1fd   :  { %v485_v63 = vrot.slane %v484_v14, 2  ;;  %v1036_v36 = vpop.permute.xlu2 %1035  ;;  %v1252_v7 = vsel %vm1216_vm7, %v719_v29, %v2632_v16  ;;  %v822_v16 = vmul.f32 %v2442_v0, %v2663_v11  ;;  %v841_v29 = vmax.f32 %v833_v26, 0.0 }
 0x1fe   :  { %v1253_v25 = vsel %vm1218_vm8, %v726_v39, %v1252_v7  ;;  %v1056_v59 = vmul.f32 %v2499_v51, %v1036_v36 }
 0x1ff   :  { %v486_v46 = vadd.f32 %v485_v63, %v484_v14  ;;  %v1271_v35 = vmul.f32 0.125, %v1253_v25  ;;  %v830_v53 = vadd.f32 %v2452_v5, %v822_v16  ;;  %v903_v14 = vmul.f32 %v877_v9, %v839_v32  ;;  %v898_v25 = vpop.permute.xlu1 %897 }
 0x200   :  { %v1064_v57 = vadd.f32 %v2507_v56, %v1056_v59  ;;  %v905_v7 = vmul.f32 %v891_v24, %v841_v29 }
 0x201   :  { %v487_v19 = vrot.slane %v486_v46, 1  ;;  %1822 = vmatmul.msk.f32.vlgmr.msra.gmra.mxu1 %vm432_vm0, %v1271_v35  ;;  %v838_v23 = vmax.f32 %v830_v53, 0.0 }
 0x202   :  { %v1072_v62 = vmax.f32 %v1064_v57, 0.0 }
 0x203   :  { %v488_v58 = vadd.f32 %v487_v19, %v486_v46  ;;  %v902_v2 = vmul.f32 %v870_v17, %v838_v23  ;;  %v824_v17 = vmul.f32 %v2442_v0, %v2521_v8 }
 0x204   :  { %v1136_v49 = vmul.f32 %v1116_v41, %v1072_v62 }
 0x205   :  { %v818_v30 = vpop.permute.xlu2 %817  ;;  %v1219_v48 = vsel %vm1218_vm8, %v488_v58, %v1217_v31  ;;  %v1071_v31 = vmax.f32 %v1063_v45, 0.0  ;;  %v928_v39 = vsel %vm432_vm0, %v902_v2, 0.0  ;;  %v935_v58 = vsel %vm432_vm0, %v903_v14, 0.0 }
 0x206   :  { %v1237_v43 = vmul.f32 0.125, %v1219_v48  ;;  %v826_v11 = vmul.f32 %v2442_v0, %v818_v30  ;;  %v1174_v3 = vsel %vm432_vm0, %v1136_v49, 0.0  ;;  %v929_v13 = vrot.slane %v928_v39, 4 }
 0x207   :  { %v1135_v10 = vmul.f32 %v1109_v50, %v1071_v31  ;;  %v1175_v63 = vrot.slane %v1174_v3, 4  ;;  %v1070_v48 = vmax.f32 %v1062_v47, 0.0  ;;  %v936_v22 = vrot.slane %v935_v58, 4 }
 0x208   :  { %1820 = vmatmul.msk.f32.vlgmr.msra.gmra.mxu0 %vm432_vm0, %v1237_v43  ;;  %v834_v20 = vadd.f32 %v2452_v5, %v826_v11  ;;  %v949_v43 = vsel %vm432_vm0, %v905_v7, 0.0  ;;  %v832_v61 = vadd.f32 %v2452_v5, %v824_v17  ;;  %v930_v31 = vadd.f32 %v929_v13, %v928_v39 }
 0x209   :  { %v1167_v15 = vsel %vm432_vm0, %v1135_v10, 0.0  ;;  %v1176_v30 = vadd.f32 %v1175_v63, %v1174_v3  ;;  %v950_v62 = vrot.slane %v949_v43, 4  ;;  %v937_v10 = vadd.f32 %v936_v22, %v935_v58 }
 0x20a   :  { %v842_v12 = vmax.f32 %v834_v20, 0.0  ;;  %v1168_v6 = vrot.slane %v1167_v15, 4  ;;  %v1057_v49 = vmul.f32 %v2499_v51, %v2536_v52  ;;  %v931_v20 = vrot.slane %v930_v31, 2 }
 0x20b   :  { %v1177_v11 = vrot.slane %v1176_v30, 2  ;;  %v951_v2 = vadd.f32 %v950_v62, %v949_v43 }
 0x20c   :  { %v906_v19 = vmul.f32 %v898_v25, %v842_v12  ;;  %v1169_v9 = vadd.f32 %v1168_v6, %v1167_v15  ;;  %v840_v15 = vmax.f32 %v832_v61, 0.0  ;;  %v938_v12 = vrot.slane %v937_v10, 2 }
 0x20d   :  { %v1050_v4 = vpop.permute.xlu2 %1049  ;;  %v1065_v47 = vadd.f32 %v2507_v56, %v1057_v49  ;;  %v952_v14 = vrot.slane %v951_v2, 2 }
 0x20e   :  { %v1058_v54 = vmul.f32 %v2499_v51, %v1050_v4  ;;  %v956_v50 = vsel %vm432_vm0, %v906_v19, 0.0  ;;  %v1170_v8 = vrot.slane %v1169_v9, 2  ;;  %v1130_v4 = vpop.permute.xlu0 %1129  ;;  %v932_v51 = vadd.f32 %v931_v20, %v930_v31 }
 0x20f   :  { %v957_v41 = vrot.slane %v956_v50, 4  ;;  %v953_v58 = vadd.f32 %v952_v14, %v951_v2 }
 0x210   :  { %v1066_v46 = vadd.f32 %v2507_v56, %v1058_v54  ;;  %v1171_v5 = vadd.f32 %v1170_v8, %v1169_v9 }
 0x211   :  { %v958_v32 = vadd.f32 %v957_v41, %v956_v50  ;;  %v954_v61 = vrot.slane %v953_v58, 1 }
 0x212   :  { %v1074_v16 = vmax.f32 %v1066_v46, 0.0  ;;  %v1172_v29 = vrot.slane %v1171_v5, 1  ;;  %v939_v46 = vadd.f32 %v938_v12, %v937_v10 }
 0x214   :  { %v1138_v60 = vmul.f32 %v1130_v4, %v1074_v16  ;;  %v1173_v17 = vadd.f32 %v1172_v29, %v1171_v5  ;;  %v940_v16 = vrot.slane %v939_v46, 1 }
 0x215   :  { %v863_v55 = vpop.permute.xlu2 %862 }
 0x216   :  { %v901_v38 = vmul.f32 %v863_v55, %v837_v34  ;;  %v1178_v34 = vadd.f32 %v1177_v11, %v1176_v30  ;;  %v1188_v3 = vsel %vm432_vm0, %v1138_v60, 0.0  ;;  %v955_v60 = vadd.f32 %v954_v61, %v953_v58 }
 0x217   :  { %v1189_v6 = vrot.slane %v1188_v3, 4 }
 0x218   :  { %v921_v36 = vsel %vm432_vm0, %v901_v38, 0.0  ;;  %v1179_v63 = vrot.slane %v1178_v34, 1 }
 0x219   :  { %v922_v35 = vrot.slane %v921_v36, 4  ;;  %v1190_v13 = vadd.f32 %v1189_v6, %v1188_v3 }
 0x21a   :  { %v1180_v56 = vadd.f32 %v1179_v63, %v1178_v34  ;;  %v1874_v63 = vld [vmem:[%s2841_s9] ss:$0 sm:$0xff]  ;;  %s1605_s9 = sld [smem:[#allocation3]] }
 0x21b   :  { %v923_v59 = vadd.f32 %v922_v35, %v921_v36  ;;  %v959_v36 = vrot.slane %v958_v32, 2  ;;  %v933_v35 = vrot.slane %v932_v51, 1  ;;  %v1191_v31 = vrot.slane %v1190_v13, 2 }
 0x21d   :  { %v924_v45 = vrot.slane %v923_v59, 2  ;;  %v1102_v57 = vpop.permute.xlu2 %1101  ;;  %v960_v9 = vadd.f32 %v959_v36, %v958_v32  ;;  %v934_v22 = vadd.f32 %v933_v35, %v932_v51  ;;  %v1880_v51 = vld [vmem:[#allocation10 + $0x8] sm:$0xff] }
 0x21e   :  { %v1134_v53 = vmul.f32 %v1102_v57, %v1070_v48 }
 0x21f   :  { %v925_v0 = vadd.f32 %v924_v45, %v923_v59  ;;  %v1073_v59 = vmax.f32 %v1065_v47, 0.0  ;;  %v961_v4 = vrot.slane %v960_v9, 1 }
 0x220   :  { %v1160_v21 = vsel %vm432_vm0, %v1134_v53, 0.0 }
 0x221   :  { %v926_v23 = vrot.slane %v925_v0, 1  ;;  %v1161_v33 = vrot.slane %v1160_v21, 4  ;;  %v962_v49 = vadd.f32 %v961_v4, %v960_v9 }
 0x223   :  { %v927_v44 = vadd.f32 %v926_v23, %v925_v0  ;;  %v1162_v26 = vadd.f32 %v1161_v33, %v1160_v21  ;;  %v1192_v23 = vadd.f32 %v1191_v31, %v1190_v13 }
 0x225   :  { %v1230_v54 = vsel %vm1208_vm2, %v927_v44, %v2657_v42  ;;  %v1163_v55 = vrot.slane %v1162_v26, 2  ;;  %v884_v24 = vpop.permute.xlu2 %883  ;;  %v1193_v34 = vrot.slane %v1192_v23, 1 }
 0x226   :  { %v904_v38 = vmul.f32 %v884_v24, %v840_v15  ;;  %v1231_v11 = vsel %vm1210_vm3, %v934_v22, %v1230_v54 }
 0x227   :  { %v1164_v52 = vadd.f32 %v1163_v55, %v1162_v26  ;;  %v1194_v3 = vadd.f32 %v1193_v34, %v1192_v23  ;;  %v1700_v34 = vld [vmem:[#allocation18 + $0x8] sm:$0xff] }
 0x228   :  { %v942_v39 = vsel %vm432_vm0, %v904_v38, 0.0  ;;  %v2752_v38 = vld [vmem:[#allocation10] sm:$0xff] }
 0x229   :  { %v1165_v7 = vrot.slane %v1164_v52, 1  ;;  %v943_v25 = vrot.slane %v942_v39, 4 }
 0x22b   :  { %v1166_v42 = vadd.f32 %v1165_v7, %v1164_v52  ;;  %v944_v19 = vadd.f32 %v943_v25, %v942_v39  ;;  %v2186_v52 = vmov 0   ;;  %v1873_v25 = vld [vmem:[#allocation15] ss:$0 sm:$0xff] }
 0x22c   :  { %1868 = vset.pattern.permute.xlu0 %v2186_v52 }
 0x22d   :  { %v1265_v30 = vsel %vm1210_vm3, %v1166_v42, %v2685_v28  ;;  %v945_v48 = vrot.slane %v944_v19, 2  ;;  %v1123_v43 = vpop.permute.xlu2 %1122  ;;  %v941_v28 = vadd.f32 %v940_v16, %v939_v46 }
 0x22e   :  { %v1137_v45 = vmul.f32 %v1123_v43, %v1073_v59  ;;  %v1266_v57 = vsel %vm1212_vm4, %v1173_v17, %v1265_v30 }
 0x22f   :  { %v946_v50 = vadd.f32 %v945_v48, %v944_v19  ;;  %v1267_v53 = vsel %vm1214_vm5, %v1180_v56, %v1266_v57  ;;  %v1232_v33 = vsel %vm1212_vm4, %v941_v28, %v1231_v11 }
 0x230   :  { %v1181_v0 = vsel %vm432_vm0, %v1137_v45, 0.0 }
 0x231   :  { %v947_v8 = vrot.slane %v946_v50, 1  ;;  %v1182_v62 = vrot.slane %v1181_v0, 4 }
 0x233   :  { %v948_v21 = vadd.f32 %v947_v8, %v946_v50  ;;  %v1183_v41 = vadd.f32 %v1182_v62, %v1181_v0 }
 0x235   :  { %v1184_v10 = vrot.slane %v1183_v41, 2  ;;  %v1233_v20 = vsel %vm1214_vm5, %v948_v21, %v1232_v33  ;;  %v1671_v33 = vld [vmem:[#allocation16 + $0x18] sm:$0xff] }
 0x236   :  { %v1234_v44 = vsel %vm1216_vm7, %v955_v60, %v1233_v20  ;;  %v1608_v60 = vstv %s1605_s9  ;;  %v1701_v20 = vld [vmem:[#allocation18 + $0x10] sm:$0xff]  ;;  %s2189_s9 = smov 16  }
 0x237   :  { %v1185_v26 = vadd.f32 %v1184_v10, %v1183_v41  ;;  %v1235_v5 = vsel %vm1218_vm8, %v962_v49, %v1234_v44  ;;  %vm1609_vm9 = vcmp.eq.s32.totalorder %v2368_v1, %v1608_v60  ;;  %v1702_v10 = vld [vmem:[#allocation18 + $0x18] sm:$0xff]  ;;  %v1670_v49 = vld [vmem:[#allocation16 + $0x10] sm:$0xff]  ;;  %v2187_v44 = vmov 0.0   ;;  %v1739_v60 = vld [vmem:[%s2853_s21 + $0x18] sm:$0xff] }
 0x238   :  { %v1238_v2 = vmul.f32 0.125, %v1235_v5 }
 0x239   :  { %v1186_v15 = vrot.slane %v1185_v26, 1 }
 0x23a   :  { %1821 = vmatmul.msk.f32.gmra.mxu0 %vm432_vm0, %v1238_v2  ;;  %v1669_v2 = vld [vmem:[#allocation16 + $0x8] sm:$0xff] }
 0x23b   :  { %v1187_v32 = vadd.f32 %v1186_v15, %v1185_v26  ;;  %v1837_v26 = vsel %vm1609_vm9, 1.0, %v2187_v44  ;;  %v1668_v15 = vld [vmem:[#allocation16] sm:$0xff] }
 0x23d   :  { %v1268_v54 = vsel %vm1216_vm7, %v1187_v32, %v1267_v53  ;;  %v1699_v32 = vld [vmem:[#allocation18] sm:$0xff] }
 0x23e   :  { %v1269_v55 = vsel %vm1218_vm8, %v1194_v3, %v1268_v54  ;;  %v1639_v3 = vstv %s1839_s14  ;;  %v1643_v54 = vstv %s1840_s4 }
 0x23f   :  { %v1272_v24 = vmul.f32 0.125, %v1269_v55  ;;  %vm1640_vm11 = vcmp.eq.s32.totalorder %v2368_v1, %v1639_v3  ;;  %vm1644_vm12 = vcmp.eq.s32.totalorder %v2368_v1, %v1643_v54  ;;  %v1878_v3 = vld [vmem:[#allocation19] ss:$0 sm:$0xff] }
 0x240   :  { %v1399_v12 = vpop.f32.mrf.mxu2  ;;  %v1842_v52 = vsel %vm1644_vm12, 1.0, %v2187_v44 }
 0x241   :  { %1823 = vmatmul.msk.f32.gmra.mxu1 %vm432_vm0, %v1272_v24  ;;  %1423 = vmatpush.msra.mxu3 %v1399_v12  ;;  %v1734_v24 = vld [vmem:[%s2852_s20 + $0x18] sm:$0xff] }
 0x242   :  { %1826 = vmatmul.msk.f32.vlgmr.msra.gmra.mxu3 %vm727_vm6, %v2752_v38  ;;  %1778 = vmatpush.msra.mxu2 %v1734_v24 }
 0x248   :  { %v1402_v47 = vpop.f32.mrf.mxu2 }
 0x249   :  { %1446 = vmatpush.msrb.mxu3 %v1402_v47 }
 0x24a   :  { %1827 = vmatmul.msk.f32.vlgmr.msrb.gmra.mxu3 %vm727_vm6, %v1880_v51 }
 0x24b   :  { %1473 = vmatpush.msra.mxu3 %v2568_v18 }
 0x24d   :  { %1474 = vmatpush.msra.mxu3 %v2580_v37  ;;  %v1875_v37 = vld [vmem:[%s2843_s11] ss:$0 sm:$0xff]  ;;  %s1836_s11 = sld [smem:[#allocation3 + $0x1]] }
 0x24e   :  { %v1197_v6 = vpop.xlane.xlu1 %1196 }
 0x24f   :  { %1475 = vmatpush.msra.mxu3 %v2590_v40  ;;  %v1274_v39 = vmul.f32 0.125, %v1197_v6 }
 0x251   :  { %1476 = vmatpush.msra.mxu3 %v2599_v27 }
 0x253   :  { %v1612_v23 = vstv %s1836_s11  ;;  %1691 = vmatpush.msrb.mxu3 %v1671_v33  ;;  %v1738_v33 = vld [vmem:[%s2853_s21 + $0x10] sm:$0xff]  ;;  %s2190_s11 = smov 1  }
 0x254   :  { %vm1613_vm10 = vcmp.eq.s32.totalorder %v2368_v1, %v1612_v23  ;;  %v1731_v23 = vld [vmem:[%s2852_s20] sm:$0xff] }
 0x255   :  { %v1838_v5 = vsel %vm1613_vm10, 1.0, %v2187_v44  ;;  %1692 = vmatpush.msrb.mxu3 %v1670_v49  ;;  %v1736_v49 = vld [vmem:[%s2853_s21] sm:$0xff] }
 0x256   :  { %v1616_v55 = vadd.f32 %v1838_v5, %v1837_v26 }
 0x257   :  { %1693 = vmatpush.msrb.mxu3 %v1669_v2  ;;  %v1877_v2 = vld [vmem:[%s2873_s8] ss:$0 sm:$0xff] }
 0x258   :  { %v1617_v47 = vmul.f32 0.5, %v1616_v55 }
 0x259   :  { %1694 = vmatpush.msrb.mxu3 %v1668_v15 }
 0x26f   :  { %v730_v29 = vpop.xlane.xlu2 %729 }
 0x270   :  { %v1273_v14 = vmul.f32 0.125, %v730_v29 }
 0x272   :  { %1353 = vperm.xlu0 %1868, %v1273_v14  }
 0x27a   :  { %1358 = vperm.xlu0 %1868, %v1274_v39  }
 0x27e   :  { %v1343_v36 = vpop.f32.mrf.mxu1 }
 0x27f   :  { %v1344_v40 = vadd.f32 %v1873_v25, %v1343_v36 }
 0x285   :  { %v1306_v7 = vpop.f32.mrf.mxu0 }
 0x286   :  { %v1307_v18 = vadd.f32 %v1874_v63, %v1306_v7 }
 0x288   :  { %v1349_v46 = vadd.f32 %v1344_v40, %v1307_v18 }
 0x2b7   :  { %v1309_v58 = vpop.f32.mrf.mxu0 }
 0x2b8   :  { %v1310_v56 = vadd.f32 %v1874_v63, %v1309_v58 }
 0x2be   :  { %v1346_v42 = vpop.f32.mrf.mxu1 }
 0x2bf   :  { %v1347_v13 = vadd.f32 %v1873_v25, %v1346_v42 }
 0x2c1   :  { %v1350_v48 = vadd.f32 %v1347_v13, %v1310_v56 }
 0x2c5   :  { %v1425_v19 = vpop.f32.mrf.mxu3 }
 0x2cd   :  { %v1448_v57 = vpop.f32.mrf.mxu3 }
 0x2e4   :  { %v1354_v27 = vpop.permute.xlu0 %1353 }
 0x2e5   :  { %v1364_v35 = vmul.f32 %v1875_v37, %v1354_v27 }
 0x2e7   :  { %v1366_v17 = vadd.f32 %v1364_v35, %v1349_v46 }
 0x2e9   :  { %v2767_v59 = vmul.f32 0.33333334, %v1366_v17 }
 0x2eb   :  { %v1451_v9 = vadd.f32 %v1425_v19, %v2767_v59 }
 0x2ec   :  { %v1359_v30 = vpop.permute.xlu0 %1358 }
 0x2ed   :  { %v1453_v43 = vmax.f32 %v1451_v9, 0.0  ;;  %v1365_v16 = vmul.f32 %v1875_v37, %v1359_v30 }
 0x2ef   :  { %v1367_v45 = vadd.f32 %v1365_v16, %v1350_v48  ;;  %1828 = vmatmul.msk.f32.vlgmr.msra.gmra.mxu3 %vm432_vm0, %v1453_v43 }
 0x2f1   :  { %v2771_v22 = vmul.f32 0.33333334, %v1367_v45 }
 0x2f3   :  { %v1452_v50 = vadd.f32 %v1448_v57, %v2771_v22 }
 0x2f5   :  { %v1454_v53 = vmax.f32 %v1452_v50, 0.0 }
 0x2f7   :  { %1829 = vmatmul.msk.f32.gmra.mxu3 %vm432_vm0, %v1454_v53 }
 0x372   :  { %v1478_v61 = vpop.f32.mrf.mxu3 }
 0x373   :  { %1499 = vmatpush.msrb.mxu0 %v1478_v61 }
 0x374   :  { %1830 = vmatmul.msk.f32.vlgmr.msrb.gmra.mxu0 %vm727_vm6, %v2752_v38 }
 0x37a   :  { %v1481_v31 = vpop.f32.mrf.mxu3 }
 0x37b   :  { %1519 = vmatpush.msrb.mxu1 %v1481_v31 }
 0x37c   :  { %1831 = vmatmul.msk.f32.vlgmr.msrb.gmra.mxu1 %vm727_vm6, %v1880_v51 }
 0x3f1   :  { %v1501_v0 = vpop.f32.mrf.mxu0 }
 0x3f2   :  { %v1524_v8 = vadd.f32 %v1501_v0, %v2767_v59 }
 0x3f4   :  { %v1526_v62 = vmax.f32 %v1524_v8, 0.0 }
 0x3f6   :  { %1832 = vmatmul.msk.f32.vlgmr.msrb.gmra.mxu2 %vm432_vm0, %v1526_v62 }
 0x3f9   :  { %v1521_v4 = vpop.f32.mrf.mxu1 }
 0x3fa   :  { %v1525_v11 = vadd.f32 %v1521_v4, %v2771_v22 }
 0x3fc   :  { %v1527_v28 = vmax.f32 %v1525_v11, 0.0 }
 0x3fe   :  { %1833 = vmatmul.msk.f32.gmra.mxu2 %vm432_vm0, %v1527_v28 }
 0x479   :  { %v1551_v21 = vpop.f32.mrf.mxu2 }
 0x47a   :  { %1572 = vmatpush.msra.mxu0 %v1551_v21  ;;  %v1733_v21 = vld [vmem:[%s2852_s20 + $0x10] sm:$0xff] }
 0x47b   :  { %1834 = vmatmul.msk.f32.vlgmr.msra.gmra.mxu0 %vm727_vm6, %v2752_v38  ;;  %1779 = vmatpush.msra.mxu2 %v1733_v21 }
 0x47c   :  { %1722 = vmatpush.msrb.mxu0 %v1702_v10  ;;  %v1737_v10 = vld [vmem:[%s2853_s21 + $0x8] sm:$0xff]  ;;  %s2188_s21 = smov [#allocation21]  }
 0x47d   :  { %s1800_s3 = sshll.u32 %s2188_s21, 4  ;;  %s1801_s3 = int_to_ptr.vmem [resolvable:$true] %s1800_s3 }
 0x47e   :  { %1723 = vmatpush.msrb.mxu0 %v1701_v20  ;;  %v1876_v20 = vld [vmem:[%s2851_s19] ss:$0 sm:$0xff] }
 0x480   :  { %1724 = vmatpush.msrb.mxu0 %v1700_v34 }
 0x481   :  { %v1554_v41 = vpop.f32.mrf.mxu2 }
 0x482   :  { %1592 = vmatpush.msra.mxu1 %v1554_v41  ;;  %1725 = vmatpush.msrb.mxu0 %v1699_v32  ;;  %v1732_v41 = vld [vmem:[%s2852_s20 + $0x8] sm:$0xff] }
 0x483   :  { %1835 = vmatmul.msk.f32.vlgmr.msra.gmra.mxu1 %vm727_vm6, %v1880_v51  ;;  %v1841_v51 = vsel %vm1640_vm11, 1.0, %v2187_v44  ;;  %1780 = vmatpush.msra.mxu2 %v1732_v41 }
 0x484   :  { %v1647_v39 = vadd.f32 %v1842_v52, %v1841_v51  ;;  %1755 = vmatpush.msrb.mxu1 %v1739_v60 }
 0x485   :  { %1781 = vmatpush.msra.mxu2 %v1731_v23 }
 0x486   :  { %v1648_v37 = vmul.f32 0.5, %v1647_v39  ;;  %1756 = vmatpush.msrb.mxu1 %v1738_v33 }
 0x488   :  { %1757 = vmatpush.msrb.mxu1 %v1737_v10 }
 0x48a   :  { %1758 = vmatpush.msrb.mxu1 %v1736_v49 }
 0x4f8   :  { %v1574_v12 = vpop.f32.mrf.mxu0 }
 0x4f9   :  { %v1597_v38 = vadd.f32 %v1574_v12, %v2767_v59 }
 0x4fb   :  { %v1599_v29 = vmax.f32 %v1597_v38, 0.0 }
 0x4fd   :  { %v1618_v14 = vmul.f32 %v1617_v47, %v1599_v29  ;;  %v1626_v6 = vsel %vm432_vm0, %v1599_v29, 0.0 }
 0x4fe   :  { %v1627_v63 = vrot.slane %v1626_v6, 4 }
 0x4ff   :  { %v1619_v36 = vsel %vm432_vm0, %v1618_v14, 0.0 }
 0x500   :  { %v1620_v7 = vrot.slane %v1619_v36, 4  ;;  %v1628_v25 = vadd.f32 %v1627_v63, %v1626_v6  ;;  %v1594_v18 = vpop.f32.mrf.mxu1 }
 0x501   :  { %v1598_v1 = vadd.f32 %v1594_v18, %v2771_v22 }
 0x502   :  { %v1621_v40 = vadd.f32 %v1620_v7, %v1619_v36  ;;  %v1629_v27 = vrot.slane %v1628_v25, 2 }
 0x503   :  { %v1600_v46 = vmax.f32 %v1598_v1, 0.0 }
 0x504   :  { %v1622_v19 = vrot.slane %v1621_v40, 2  ;;  %v1630_v17 = vadd.f32 %v1629_v27, %v1628_v25 }
 0x505   :  { %v1649_v35 = vmul.f32 %v1648_v37, %v1600_v46  ;;  %v1657_v42 = vsel %vm432_vm0, %v1600_v46, 0.0 }
 0x506   :  { %v1658_v58 = vrot.slane %v1657_v42, 4  ;;  %v1623_v9 = vadd.f32 %v1622_v19, %v1621_v40  ;;  %v1631_v30 = vrot.slane %v1630_v17, 1 }
 0x507   :  { %v1650_v13 = vsel %vm432_vm0, %v1649_v35, 0.0 }
 0x508   :  { %v1651_v59 = vrot.slane %v1650_v13, 4  ;;  %v1659_v56 = vadd.f32 %v1658_v58, %v1657_v42  ;;  %v1624_v57 = vrot.slane %v1623_v9, 1  ;;  %v1632_v22 = vadd.f32 %v1631_v30, %v1630_v17 }
 0x50a   :  { %v1652_v48 = vadd.f32 %v1651_v59, %v1650_v13  ;;  %v1660_v43 = vrot.slane %v1659_v56, 2  ;;  %v1625_v0 = vadd.f32 %v1624_v57, %v1623_v9  ;;  %v1633_v8 = vmul.f32 0.125, %v1632_v22 }
 0x50c   :  { %v1653_v16 = vrot.slane %v1652_v48, 2  ;;  %v1661_v45 = vadd.f32 %v1660_v43, %v1659_v56 }
 0x50e   :  { %v1654_v50 = vadd.f32 %v1653_v16, %v1652_v48  ;;  %v1662_v53 = vrot.slane %v1661_v45, 1 }
 0x510   :  { %v1655_v61 = vrot.slane %v1654_v50, 1  ;;  %v1663_v31 = vadd.f32 %v1662_v53, %v1661_v45 }
 0x512   :  { %v1656_v62 = vadd.f32 %v1655_v61, %v1654_v50  ;;  %v1664_v4 = vmul.f32 0.125, %v1663_v31 }
 0x514   :  { %v1666_v11 = vsel %vm1665_vm13, %v1625_v0, %v1656_v62  ;;  %v1667_v28 = vsel %vm1665_vm13, %v1633_v8, %v1664_v4 }
 0x515   :  { %1843 = vmatmul.msk.f32.vlgmr.msrb.gmra.mxu3 %vm432_vm0, %v1666_v11  ;;  %1844 = vmatmul.msk.f32.vlgmr.msrb.gmra.mxu0 %vm432_vm0, %v1667_v28 }
 0x592   :  { %v1727_v44 = vpop.f32.mrf.mxu0 }
 0x593   :  { %v1728_v26 = vadd.f32 %v1876_v20, %v1727_v44 }
 0x595   :  { %v1730_v5 = vmax.f32 %v1728_v26, 0.0 }
 0x597   :  { %1846 = vmatmul.msk.f32.vlgmr.msra.gmra.mxu2 %vm432_vm0, %v1730_v5 }
 0x598   :  { %v1696_v34 = vpop.f32.mrf.mxu3 }
 0x599   :  { %v1697_v15 = vadd.f32 %v1877_v2, %v1696_v34 }
 0x59b   :  { %v1735_v32 = vmax.f32 %v1697_v15, 0.0 }
 0x59d   :  { %1845 = vmatmul.msk.f32.vlgmr.msrb.gmra.mxu1 %vm432_vm0, %v1735_v32 }
 0x61a   :  { %v1760_v54 = vpop.f32.mrf.mxu1  ;;  %v1783_v55 = vpop.f32.mrf.mxu2 }
 0x61b   :  { %v1784_v24 = vadd.f32 %v1783_v55, %v1760_v54 }
 0x61d   :  { %v1790_v12 = vadd.f32 %v1878_v3, %v1784_v24 }
 0x61f   :  { %1792 = vst.msk [vmem:[#allocation21] sm:$0x1] %vm1791_vm14, %v1790_v12 }
 0x620   :  { %1795 = vst.msk [vmem:[#allocation21] sm:$0x2] %vm1794_vm15, %v1790_v12 }
 0x621   :  { %1808 = dma.vmem_to_hbm [thread:$0]  %s1801_s3, 32, %s1803_s6, [#allocation6], %s2189_s9, %s2189_s9, %s2190_s11  }
 0x622   :  { %2171 = dma.done.wait [#allocation6], 32  }
 0x623   :  { %2172 = vsyncadd [#allocation6], 4294967264 }
 0x624   :  { %1813 = vsyncpa [#allocation5], 1 }
 0x625   :  { %1814 = vsyncpa [#allocation8], 1 }
 0x626   :  { %1815 = vsyncpa [#allocation11], 1 }
 0x627   :  { %1816 = vsyncpa [#allocation14], 1 }
 0x628   :  { %1817 = vsyncpa [#allocation17], 1 }
 0x629   :  { %1818 = vsyncpa [#allocation20], 1 }
 0x62a   :  { %1819 = vsyncpa [#allocation6], 1 }

</bundles_post_ra>
